<compile_context>
chip_gen: v5e
topology: v5e:2x2
jax: 0.10.0
libtpu: 0.0.40
codegen_flags: <defaults>
</compile_context>

<pallas_src>
import functools

import jax
import jax.numpy as jnp
from jax.experimental import pallas as pl
from jax.experimental.pallas import tpu as pltpu


# True out_features of the 7 Linear layers.
HIDDEN = (1024, 512, 256, 128, 64, 32, 1)
# Lane-padded out_features (everything below 128 is padded up to 128).
PAD_OUT = (1024, 512, 256, 128, 128, 128, 128)
# Offsets of each layer's bias inside the single concatenated bias buffer.
BIAS_OFF = tuple(sum(PAD_OUT[:i]) for i in range(len(PAD_OUT)))   # 128-aligned
BIAS_TOTAL = sum(PAD_OUT)                                          # 2304
NEG_SLOPE = 0.1  # LeakyReLU(0.1)


def _round_up(n, m):
    return (n + m - 1) // m * m


@functools.lru_cache(maxsize=1)
def _vmem_limit_bytes():
    """64 MiB on v5e/v6e (128 MiB VMEM), 32 MiB on v7x (64 MiB/TC); safe fallback."""
    try:
        cap = int(pltpu.get_tpu_info().vmem_capacity_bytes)
    except Exception:
        return 32 * 1024 * 1024
    return int(min(64 * 1024 * 1024, max(cap // 2, 16 * 1024 * 1024)))


def mlp_kernel(x_ref,
               w1_ref, w2_ref, w3_ref, w4_ref, w5_ref, w6_ref, w7_ref,
               bias_ref, o_ref):
    """Fused 7-layer MLP over one batch tile. Weights/biases resident in VMEM."""
    w_refs = (w1_ref, w2_ref, w3_ref, w4_ref, w5_ref, w6_ref)
    h = x_ref[...]                                   # (tb, in_dim) bf16
    for li, w_ref in enumerate(w_refs):
        off, width = BIAS_OFF[li], PAD_OUT[li]
        b = bias_ref[:, off:off + width]             # (1, width) f32, 128-aligned
        z = jnp.dot(h, w_ref[...],
                    preferred_element_type=jnp.float32) + b       # f32 accum
        # LeakyReLU(0.1) in f32, stored as bf16 for the next MXU dot.
        # (Dropout is identity in eval mode.)
        h = jnp.maximum(z, NEG_SLOPE * z).astype(jnp.bfloat16)
    # Layer 7 (32 -> 1) as a lane reduction: avoids a padded (tb,128) matmul
    # result and the 128x-amplified HBM writeback.
    b7 = bias_ref[:, BIAS_OFF[6]:BIAS_OFF[6] + 1]    # (1, 1)
    z7 = jnp.sum(h.astype(jnp.float32) * w7_ref[...],
                 axis=-1, keepdims=True) + b7        # (tb, 1) f32
    o_ref[...] = z7.astype(o_ref.dtype)


@functools.partial(jax.jit, static_argnames=("tile_b",))
def improved_regression_forward(x, packed, *, tile_b=1024):
    """x: (batch, input_dim) f32. packed = (weights tuple, bias (1, 2304) f32)."""
    ws, bias = packed
    batch, input_dim = x.shape

    # Batch tile: multiple of 128 when the batch is large, else sublane multiple.
    if batch >= 128:
        tb = min(tile_b, _round_up(batch, 128))
    else:
        tb = _round_up(batch, 8)
    batch_p = _round_up(batch, tb)
    # If everything fits in one tile, split in two so the grid has >=2 steps
    # (engages the second v7x TensorCore; negligible overhead on v5e/v6e).
    if batch_p == tb and tb >= 256:
        tb //= 2
    grid = (batch_p // tb,)

    xb = x.astype(jnp.bfloat16)                      # halve x DMA bytes
    if batch_p != batch:
        xb = jnp.pad(xb, ((0, batch_p - batch), (0, 0)))

    in_specs = [pl.BlockSpec((tb, input_dim), lambda i: (i, 0))]
    for w in ws:                                     # weights: resident across tiles
        in_specs.append(pl.BlockSpec(w.shape, lambda i: (0, 0)))
    in_specs.append(pl.BlockSpec(bias.shape, lambda i: (0, 0)))

    # Advisory cost estimate for XLA's scheduler.
    dims = (input_dim,) + HIDDEN
    flops_per_row = sum(2 * dims[i] * dims[i + 1] for i in range(len(HIDDEN)))
    bytes_accessed = (int(xb.size) * 2
                      + sum(int(w.size) * w.dtype.itemsize for w in ws)
                      + int(bias.size) * 4
                      + batch_p * 4)

    out = pl.pallas_call(
        mlp_kernel,
        grid=grid,
        in_specs=in_specs,
        out_specs=pl.BlockSpec((tb, 1), lambda i: (i, 0)),
        out_shape=jax.ShapeDtypeStruct((batch_p, 1), jnp.float32),
        compiler_params=pltpu.CompilerParams(
            dimension_semantics=("parallel",),       # megacore split on v7x
            vmem_limit_bytes=_vmem_limit_bytes(),
        ),
        cost_estimate=pl.CostEstimate(
            flops=flops_per_row * batch_p,
            transcendentals=0,
            bytes_accessed=int(bytes_accessed)),
    )(xb, *ws, bias)

    return out[:batch]                               # (batch, 1) f32


def init_params(key, input_dim):
    """nn.Linear-style init; W stored transposed as (in, out), b as (out,)."""
    dims = (input_dim,) + HIDDEN
    params = []
    for li in range(len(HIDDEN)):
        fan_in, fan_out = dims[li], dims[li + 1]
        key, kw, kb = jax.random.split(key, 3)
        bound = 1.0 / jnp.sqrt(fan_in)
        w = jax.random.uniform(kw, (fan_in, fan_out), jnp.float32, -bound, bound)
        b = jax.random.uniform(kb, (fan_out,), jnp.float32, -bound, bound)
        params.append((w, b))
    return params


def pack_params(params):
    """Pad to 128 lanes, cast layers 1-6 weights to bf16, keep layer 7 as an
    f32 row for the lane reduction, concat all biases (f32, 128-aligned)."""
    ws, bs = [], []
    for li, (w, b) in enumerate(params):
        fan_in, fan_out = w.shape
        pad_out = PAD_OUT[li]
        if li < len(params) - 1:
            pad_in = PAD_OUT[li - 1] if li > 0 else fan_in
            wp = jnp.zeros((pad_in, pad_out), jnp.bfloat16)
            wp = wp.at[:fan_in, :fan_out].set(w.astype(jnp.bfloat16))
        else:
            # Layer 7 (fan_in, 1) -> transposed row (1, 128) f32, zero padded.
            wp = jnp.zeros((1, PAD_OUT[-2]), jnp.float32).at[0, :fan_in].set(w[:, 0])
        ws.append(wp)
        bs.append(jnp.zeros((pad_out,), jnp.float32).at[:fan_out].set(b))
    bias = jnp.concatenate(bs)[None, :]              # (1, 2304)
    assert bias.shape[1] == BIAS_TOTAL
    return tuple(ws), bias


def reference_forward(x, params):
    """Pure-JAX reference with the same bf16-weight / bf16-activation numerics."""
    h = x.astype(jnp.bfloat16)
    for w, b in params[:-1]:
        z = jnp.dot(h, w.astype(jnp.bfloat16),
                    preferred_element_type=jnp.float32) + b
        h = jnp.maximum(z, NEG_SLOPE * z).astype(jnp.bfloat16)
    w7, b7 = params[-1]
    return jnp.dot(h.astype(jnp.float32), w7) + b7


if __name__ == "__main__":
    key = jax.random.PRNGKey(0)
    batch, input_dim = 8, 32

    kx, kp = jax.random.split(key)
    x = jax.random.normal(kx, (batch, input_dim), jnp.float32)
    params = init_params(kp, input_dim)
    packed = pack_params(params)

    out = improved_regression_forward(x, packed)
    out = jax.block_until_ready(out)

    ref = reference_forward(x, params)
    assert out.shape == (batch, 1), out.shape
    max_err = jnp.max(jnp.abs(out - ref))
    assert jnp.allclose(out, ref, atol=2e-3, rtol=2e-3), f"max abs err {max_err}"

    print("KERNEL_OK")
</pallas_src>

<mosaic_0001>
module attributes {stable_mosaic.version = 11 : i64} {
  func.func @mlp_kernel(%arg0: i32, %arg1: memref<8x32xbf16, #tpu.memory_space<vmem>>, %arg2: memref<32x1024xbf16, #tpu.memory_space<vmem>>, %arg3: memref<1024x512xbf16, #tpu.memory_space<vmem>>, %arg4: memref<512x256xbf16, #tpu.memory_space<vmem>>, %arg5: memref<256x128xbf16, #tpu.memory_space<vmem>>, %arg6: memref<128x128xbf16, #tpu.memory_space<vmem>>, %arg7: memref<128x128xbf16, #tpu.memory_space<vmem>>, %arg8: memref<1x128xf32, #tpu.memory_space<vmem>>, %arg9: memref<1x2304xf32, #tpu.memory_space<vmem>>, %arg10: memref<8x1xf32, #tpu.memory_space<vmem>>) attributes {dimension_semantics = [#tpu.dimension_semantics<parallel>], iteration_bounds = array<i64: 1>, scalar_prefetch = 0 : i64, scratch_operands = 0 : i64, tpu.core_type = #tpu.core_type<tc>, window_params = [{transform_indices = @transform_0, window_bounds = array<i64: 8, 32>}, {pipeline_mode = #tpu.pipeline_mode<synchronous>, transform_indices = @transform_1, window_bounds = array<i64: 32, 1024>}, {pipeline_mode = #tpu.pipeline_mode<synchronous>, transform_indices = @transform_2, window_bounds = array<i64: 1024, 512>}, {pipeline_mode = #tpu.pipeline_mode<synchronous>, transform_indices = @transform_3, window_bounds = array<i64: 512, 256>}, {pipeline_mode = #tpu.pipeline_mode<synchronous>, transform_indices = @transform_4, window_bounds = array<i64: 256, 128>}, {pipeline_mode = #tpu.pipeline_mode<synchronous>, transform_indices = @transform_5, window_bounds = array<i64: 128, 128>}, {pipeline_mode = #tpu.pipeline_mode<synchronous>, transform_indices = @transform_6, window_bounds = array<i64: 128, 128>}, {pipeline_mode = #tpu.pipeline_mode<synchronous>, transform_indices = @transform_7, window_bounds = array<i64: 1, 128>}, {pipeline_mode = #tpu.pipeline_mode<synchronous>, transform_indices = @transform_8, window_bounds = array<i64: 1, 2304>}, {transform_indices = @transform_9, window_bounds = array<i64: 8, 1>}]} {
    %c0 = arith.constant 0 : index
    %c0_0 = arith.constant 0 : index
    %0 = vector.load %arg1[%c0, %c0_0] : memref<8x32xbf16, #tpu.memory_space<vmem>>, vector<8x32xbf16>
    %c0_1 = arith.constant 0 : index
    %c0_2 = arith.constant 0 : index
    %1 = vector.load %arg9[%c0_1, %c0_2] : memref<1x2304xf32, #tpu.memory_space<vmem>>, vector<1x1024xf32>
    %c0_3 = arith.constant 0 : index
    %c0_4 = arith.constant 0 : index
    %2 = vector.load %arg2[%c0_3, %c0_4] : memref<32x1024xbf16, #tpu.memory_space<vmem>>, vector<32x1024xbf16>
    %cst = arith.constant dense<0.000000e+00> : vector<8x1024xf32>
    %3 = tpu.matmul %0, %2, %cst {dimension_numbers = #tpu.dot_dimension_numbers<[1], [0], [0], [1], [0, 0, 1, 1], [], []>} : vector<8x32xbf16>, vector<32x1024xbf16>, vector<8x1024xf32> -> vector<8x1024xf32>
    %4 = vector.broadcast %1 : vector<1x1024xf32> to vector<8x1024xf32>
    %5 = arith.addf %3, %4 : vector<8x1024xf32>
    %cst_5 = arith.constant 1.000000e-01 : f32
    %6 = vector.broadcast %cst_5 : f32 to vector<8x1024xf32>
    %7 = arith.mulf %6, %5 : vector<8x1024xf32>
    %8 = arith.maximumf %5, %7 : vector<8x1024xf32>
    %9 = arith.truncf %8 : vector<8x1024xf32> to vector<8x1024xbf16>
    %c0_6 = arith.constant 0 : index
    %c1024 = arith.constant 1024 : index
    %10 = vector.load %arg9[%c0_6, %c1024] : memref<1x2304xf32, #tpu.memory_space<vmem>>, vector<1x512xf32>
    %c0_7 = arith.constant 0 : index
    %c0_8 = arith.constant 0 : index
    %11 = vector.load %arg3[%c0_7, %c0_8] : memref<1024x512xbf16, #tpu.memory_space<vmem>>, vector<1024x512xbf16>
    %cst_9 = arith.constant dense<0.000000e+00> : vector<8x512xf32>
    %12 = tpu.matmul %9, %11, %cst_9 {dimension_numbers = #tpu.dot_dimension_numbers<[1], [0], [0], [1], [0, 0, 1, 1], [], []>} : vector<8x1024xbf16>, vector<1024x512xbf16>, vector<8x512xf32> -> vector<8x512xf32>
    %13 = vector.broadcast %10 : vector<1x512xf32> to vector<8x512xf32>
    %14 = arith.addf %12, %13 : vector<8x512xf32>
    %cst_10 = arith.constant 1.000000e-01 : f32
    %15 = vector.broadcast %cst_10 : f32 to vector<8x512xf32>
    %16 = arith.mulf %15, %14 : vector<8x512xf32>
    %17 = arith.maximumf %14, %16 : vector<8x512xf32>
    %18 = arith.truncf %17 : vector<8x512xf32> to vector<8x512xbf16>
    %c0_11 = arith.constant 0 : index
    %c1536 = arith.constant 1536 : index
    %19 = vector.load %arg9[%c0_11, %c1536] : memref<1x2304xf32, #tpu.memory_space<vmem>>, vector<1x256xf32>
    %c0_12 = arith.constant 0 : index
    %c0_13 = arith.constant 0 : index
    %20 = vector.load %arg4[%c0_12, %c0_13] : memref<512x256xbf16, #tpu.memory_space<vmem>>, vector<512x256xbf16>
    %cst_14 = arith.constant dense<0.000000e+00> : vector<8x256xf32>
    %21 = tpu.matmul %18, %20, %cst_14 {dimension_numbers = #tpu.dot_dimension_numbers<[1], [0], [0], [1], [0, 0, 1, 1], [], []>} : vector<8x512xbf16>, vector<512x256xbf16>, vector<8x256xf32> -> vector<8x256xf32>
    %22 = vector.broadcast %19 : vector<1x256xf32> to vector<8x256xf32>
    %23 = arith.addf %21, %22 : vector<8x256xf32>
    %cst_15 = arith.constant 1.000000e-01 : f32
    %24 = vector.broadcast %cst_15 : f32 to vector<8x256xf32>
    %25 = arith.mulf %24, %23 : vector<8x256xf32>
    %26 = arith.maximumf %23, %25 : vector<8x256xf32>
    %27 = arith.truncf %26 : vector<8x256xf32> to vector<8x256xbf16>
    %c0_16 = arith.constant 0 : index
    %c1792 = arith.constant 1792 : index
    %28 = vector.load %arg9[%c0_16, %c1792] : memref<1x2304xf32, #tpu.memory_space<vmem>>, vector<1x128xf32>
    %c0_17 = arith.constant 0 : index
    %c0_18 = arith.constant 0 : index
    %29 = vector.load %arg5[%c0_17, %c0_18] : memref<256x128xbf16, #tpu.memory_space<vmem>>, vector<256x128xbf16>
    %cst_19 = arith.constant dense<0.000000e+00> : vector<8x128xf32>
    %30 = tpu.matmul %27, %29, %cst_19 {dimension_numbers = #tpu.dot_dimension_numbers<[1], [0], [0], [1], [0, 0, 1, 1], [], []>} : vector<8x256xbf16>, vector<256x128xbf16>, vector<8x128xf32> -> vector<8x128xf32>
    %31 = vector.broadcast %28 : vector<1x128xf32> to vector<8x128xf32>
    %32 = arith.addf %30, %31 : vector<8x128xf32>
    %cst_20 = arith.constant 1.000000e-01 : f32
    %33 = vector.broadcast %cst_20 : f32 to vector<8x128xf32>
    %34 = arith.mulf %33, %32 : vector<8x128xf32>
    %35 = arith.maximumf %32, %34 : vector<8x128xf32>
    %36 = arith.truncf %35 : vector<8x128xf32> to vector<8x128xbf16>
    %c0_21 = arith.constant 0 : index
    %c1920 = arith.constant 1920 : index
    %37 = vector.load %arg9[%c0_21, %c1920] : memref<1x2304xf32, #tpu.memory_space<vmem>>, vector<1x128xf32>
    %c0_22 = arith.constant 0 : index
    %c0_23 = arith.constant 0 : index
    %38 = vector.load %arg6[%c0_22, %c0_23] : memref<128x128xbf16, #tpu.memory_space<vmem>>, vector<128x128xbf16>
    %cst_24 = arith.constant dense<0.000000e+00> : vector<8x128xf32>
    %39 = tpu.matmul %36, %38, %cst_24 {dimension_numbers = #tpu.dot_dimension_numbers<[1], [0], [0], [1], [0, 0, 1, 1], [], []>} : vector<8x128xbf16>, vector<128x128xbf16>, vector<8x128xf32> -> vector<8x128xf32>
    %40 = vector.broadcast %37 : vector<1x128xf32> to vector<8x128xf32>
    %41 = arith.addf %39, %40 : vector<8x128xf32>
    %cst_25 = arith.constant 1.000000e-01 : f32
    %42 = vector.broadcast %cst_25 : f32 to vector<8x128xf32>
    %43 = arith.mulf %42, %41 : vector<8x128xf32>
    %44 = arith.maximumf %41, %43 : vector<8x128xf32>
    %45 = arith.truncf %44 : vector<8x128xf32> to vector<8x128xbf16>
    %c0_26 = arith.constant 0 : index
    %c2048 = arith.constant 2048 : index
    %46 = vector.load %arg9[%c0_26, %c2048] : memref<1x2304xf32, #tpu.memory_space<vmem>>, vector<1x128xf32>
    %c0_27 = arith.constant 0 : index
    %c0_28 = arith.constant 0 : index
    %47 = vector.load %arg7[%c0_27, %c0_28] : memref<128x128xbf16, #tpu.memory_space<vmem>>, vector<128x128xbf16>
    %cst_29 = arith.constant dense<0.000000e+00> : vector<8x128xf32>
    %48 = tpu.matmul %45, %47, %cst_29 {dimension_numbers = #tpu.dot_dimension_numbers<[1], [0], [0], [1], [0, 0, 1, 1], [], []>} : vector<8x128xbf16>, vector<128x128xbf16>, vector<8x128xf32> -> vector<8x128xf32>
    %49 = vector.broadcast %46 : vector<1x128xf32> to vector<8x128xf32>
    %50 = arith.addf %48, %49 : vector<8x128xf32>
    %cst_30 = arith.constant 1.000000e-01 : f32
    %51 = vector.broadcast %cst_30 : f32 to vector<8x128xf32>
    %52 = arith.mulf %51, %50 : vector<8x128xf32>
    %53 = arith.maximumf %50, %52 : vector<8x128xf32>
    %54 = arith.truncf %53 : vector<8x128xf32> to vector<8x128xbf16>
    %c0_31 = arith.constant 0 : index
    %c2176 = arith.constant 2176 : index
    %55 = vector.load %arg9[%c0_31, %c2176] : memref<1x2304xf32, #tpu.memory_space<vmem>>, vector<1x1xf32>
    %56 = arith.extf %54 : vector<8x128xbf16> to vector<8x128xf32>
    %c0_32 = arith.constant 0 : index
    %c0_33 = arith.constant 0 : index
    %57 = vector.load %arg8[%c0_32, %c0_33] : memref<1x128xf32, #tpu.memory_space<vmem>>, vector<1x128xf32>
    %58 = vector.broadcast %57 : vector<1x128xf32> to vector<8x128xf32>
    %59 = arith.mulf %56, %58 : vector<8x128xf32>
    %cst_34 = arith.constant dense<0.000000e+00> : vector<8xf32>
    %60 = vector.multi_reduction <add>, %59, %cst_34 [1] : vector<8x128xf32> to vector<8xf32>
    %61 = vector.shape_cast %60 : vector<8xf32> to vector<8x1xf32>
    %62 = vector.broadcast %55 : vector<1x1xf32> to vector<8x1xf32>
    %63 = arith.addf %61, %62 : vector<8x1xf32>
    %c0_35 = arith.constant 0 : index
    %c0_36 = arith.constant 0 : index
    %64 = vector.load %arg10[%c0_35, %c0_36] : memref<8x1xf32, #tpu.memory_space<vmem>>, vector<8x1xf32>
    tpu.vector_store %arg10[%c0_35, %c0_36], %63 {strides = array<i32>} : memref<8x1xf32, #tpu.memory_space<vmem>>, vector<8x1xf32>,
    return
  }
  func.func @transform_0(%arg0: i32) -> (i32, i32) {
    %c0_i32 = arith.constant 0 : i32
    %c0_i32_0 = arith.constant 0 : i32
    return %arg0, %c0_i32 : i32, i32
  }
  func.func @transform_1(%arg0: i32) -> (i32, i32) {
    %c0_i32 = arith.constant 0 : i32
    %c0_i32_0 = arith.constant 0 : i32
    %c0_i32_1 = arith.constant 0 : i32
    return %c0_i32, %c0_i32_0 : i32, i32
  }
  func.func @transform_2(%arg0: i32) -> (i32, i32) {
    %c0_i32 = arith.constant 0 : i32
    %c0_i32_0 = arith.constant 0 : i32
    %c0_i32_1 = arith.constant 0 : i32
    return %c0_i32, %c0_i32_0 : i32, i32
  }
  func.func @transform_3(%arg0: i32) -> (i32, i32) {
    %c0_i32 = arith.constant 0 : i32
    %c0_i32_0 = arith.constant 0 : i32
    %c0_i32_1 = arith.constant 0 : i32
    return %c0_i32, %c0_i32_0 : i32, i32
  }
  func.func @transform_4(%arg0: i32) -> (i32, i32) {
    %c0_i32 = arith.constant 0 : i32
    %c0_i32_0 = arith.constant 0 : i32
    %c0_i32_1 = arith.constant 0 : i32
    return %c0_i32, %c0_i32_0 : i32, i32
  }
  func.func @transform_5(%arg0: i32) -> (i32, i32) {
    %c0_i32 = arith.constant 0 : i32
    %c0_i32_0 = arith.constant 0 : i32
    %c0_i32_1 = arith.constant 0 : i32
    return %c0_i32, %c0_i32_0 : i32, i32
  }
  func.func @transform_6(%arg0: i32) -> (i32, i32) {
    %c0_i32 = arith.constant 0 : i32
    %c0_i32_0 = arith.constant 0 : i32
    %c0_i32_1 = arith.constant 0 : i32
    return %c0_i32, %c0_i32_0 : i32, i32
  }
  func.func @transform_7(%arg0: i32) -> (i32, i32) {
    %c0_i32 = arith.constant 0 : i32
    %c0_i32_0 = arith.constant 0 : i32
    %c0_i32_1 = arith.constant 0 : i32
    return %c0_i32, %c0_i32_0 : i32, i32
  }
  func.func @transform_8(%arg0: i32) -> (i32, i32) {
    %c0_i32 = arith.constant 0 : i32
    %c0_i32_0 = arith.constant 0 : i32
    %c0_i32_1 = arith.constant 0 : i32
    return %c0_i32, %c0_i32_0 : i32, i32
  }
  func.func @transform_9(%arg0: i32) -> (i32, i32) {
    %c0_i32 = arith.constant 0 : i32
    %c0_i32_0 = arith.constant 0 : i32
    return %arg0, %c0_i32 : i32, i32
  }
}

</mosaic_0001>

<bundles_post_ra>
// kernel: improved_regression_forward.1
= control target key start
LH: loop header
LB: loop body
LE: loop exit
PB: predicated region body
PF: predicated region fallthrough
CT: control target
= control target key end

     0   :  { %14 = vsyncpa [#allocation3], 0  ;;  %s5472_s0 = inlined_call_operand.vmem [shape: bf16[8,32], index: 0, kind: input, shape index: {}]   ;;  %s5473_s1 = inlined_call_operand.hbm [shape: bf16[32,1024], index: 1, kind: input, shape index: {}]   ;;  %s5474_s2 = inlined_call_operand.hbm [shape: bf16[1024,512], index: 2, kind: input, shape index: {}]   ;;  %s5475_s3 = inlined_call_operand.hbm [shape: bf16[512,256], index: 3, kind: input, shape index: {}]   ;;  %s5476_s4 = inlined_call_operand.hbm [shape: bf16[256,128], index: 4, kind: input, shape index: {}]   ;;  %s5477_s5 = inlined_call_operand.hbm [shape: bf16[128,128], index: 5, kind: input, shape index: {}]   ;;  %s5478_s6 = inlined_call_operand.hbm [shape: bf16[128,128], index: 6, kind: input, shape index: {}]   ;;  %s5479_s7 = inlined_call_operand.vmem [shape: f32[1,128], index: 7, kind: input, shape index: {}]   ;;  %s5480_s8 = inlined_call_operand.vmem [shape: f32[1,2304], index: 8, kind: input, shape index: {}]   ;;  %s5481_s9 = inlined_call_operand.vmem [shape: f32[8,1], index: 9, kind: output, shape index: {}]  }
   0x1   :  { %15 = vsyncpa [#allocation5], 0 }
   0x2   :  { %16 = vsyncpa [#allocation8], 0  ;;  %s37_s11 = sshll.u32 %s5474_s2, 4  ;;  %s38_s11 = int_to_ptr.hbm [resolvable:$true] %s37_s11 }
   0x3   :  { %17 = vsyncpa [#allocation11], 0  ;;  %s5219_s12 = smov [#allocation4]   ;;  %s63_s16 = sshll.u32 %s5476_s4, 4  ;;  %s64_s16 = int_to_ptr.hbm [resolvable:$true] %s63_s16 }
   0x4   :  { %s39_s13 = sshll.u32 %s5219_s12, 4  ;;  %s5220_s17 = smov 256   ;;  %s40_s13 = int_to_ptr.vmem [resolvable:$true] %s39_s13 }
   0x5   :  { %s5221_s18 = smov 16   ;;  %s5222_s19 = smov [#allocation7]  }
   0x6   :  { %45 = dma.hbm_to_vmem [thread:$0]  %s38_s11, 32768, %s40_s13, [#allocation5], %s5220_s17, %s5220_s17, %s5221_s18  }
   0x7   :  { %s65_s20 = sshll.u32 %s5222_s19, 4  ;;  %s5223_s21 = smov 64   ;;  %s66_s20 = int_to_ptr.vmem [resolvable:$true] %s65_s20 }
   0x8   :  { %s5224_s22 = smov 4   ;;  %s24_s24 = sshll.u32 %s5473_s1, 4  ;;  %s25_s24 = int_to_ptr.hbm [resolvable:$true] %s24_s24 }
   0x9   :  { %71 = dma.hbm_to_vmem [thread:$0]  %s64_s16, 2048, %s66_s20, [#allocation8], %s5223_s21, %s5223_s21, %s5224_s22  }
   0xa   :  { %s5225_s25 = smov [#allocation2]   ;;  %s50_s28 = sshll.u32 %s5475_s3, 4  ;;  %s51_s28 = int_to_ptr.hbm [resolvable:$true] %s50_s28 }
   0xb   :  { %s26_s4 = sshll.u32 %s5225_s25, 4  ;;  %s5226_s29 = smov 512   ;;  %s27_s4 = int_to_ptr.vmem [resolvable:$true] %s26_s4 }
   0xc   :  { %s5227_s30 = smov 32   ;;  %s5228_s10 = smov [#allocation6]  }
   0xd   :  { %32 = dma.hbm_to_vmem [thread:$0]  %s25_s24, 2048, %s27_s4, [#allocation3], %s5226_s29, %s5226_s29, %s5227_s30  }
   0xe   :  { %s52_s11 = sshll.u32 %s5228_s10, 4  ;;  %s5229_s12 = smov 128   ;;  %s53_s11 = int_to_ptr.vmem [resolvable:$true] %s52_s11 }
   0xf   :  { %s5230_s13 = smov 8   ;;  %s76_s15 = sshll.u32 %s5477_s5, 4  ;;  %s77_s15 = int_to_ptr.hbm [resolvable:$true] %s76_s15 }
  0x10   :  { %58 = dma.hbm_to_vmem [thread:$0]  %s51_s28, 8192, %s53_s11, [#allocation5], %s5229_s12, %s5229_s12, %s5230_s13  }
  0x11   :  { %s5231_s16 = smov [#allocation9]   ;;  %s89_s19 = sshll.u32 %s5478_s6, 4  ;;  %s90_s19 = int_to_ptr.hbm [resolvable:$true] %s89_s19 }
  0x12   :  { %s78_s17 = sshll.u32 %s5231_s16, 4  ;;  %s5232_s20 = smov [#allocation10]   ;;  %s79_s17 = int_to_ptr.vmem [resolvable:$true] %s78_s17 }
  0x13   :  { %84 = dma.hbm_to_vmem [thread:$0]  %s77_s15, 1024, %s79_s17, [#allocation8], %s5223_s21, %s5223_s21, %s5224_s22  }
  0x14   :  { %s91_s2 = sshll.u32 %s5232_s20, 4  ;;  %s92_s2 = int_to_ptr.vmem [resolvable:$true] %s91_s2 }
  0x15   :  { %97 = dma.hbm_to_vmem [thread:$0]  %s90_s19, 1024, %s92_s2, [#allocation11], %s5223_s21, %s5223_s21, %s5224_s22  }
  0x16   :  { %5211 = dma.done.wait [#allocation3], 2048  }
  0x17   :  { %5212 = vsyncadd [#allocation3], 4294965248 }
  0x18   :  { %5213 = dma.done.wait [#allocation5], 40960  }
  0x19   :  { %5214 = vsyncadd [#allocation5], 4294926336 }
  0x1a   :  { %5215 = dma.done.wait [#allocation8], 3072  }
  0x1b   :  { %5216 = vsyncadd [#allocation8], 4294964224 }
  0x1c   :  { %5217 = dma.done.wait [#allocation11], 1024  }
  0x1d   :  { %5218 = vsyncadd [#allocation11], 4294966272  ;;  %vm242_vm0 = vcmask 261120   ;;  %v3234_v0 = vld [vmem:[#allocation2 + $0x40] sm:$0xf]  ;;  %vm3190_vm1 = vcmask 7168  }
  0x1e   :  { %v4692_v1 = vld [vmem:[#allocation2 + $0x5c] sm:$0xf0]  ;;  %v4688_v2 = vld [vmem:[#allocation2 + $0x44] sm:$0xf]  ;;  %v3242_v5 = vld [vmem:[#allocation2 + $0x48] sm:$0xf] }
  0x1f   :  { %v3235_v3 = vor.u32 %v4692_v1, %v3234_v0  ;;  %v3236_v4 = vld [vmem:[#allocation2 + $0x60] sm:$0xf0]  ;;  %v4693_v6 = vld [vmem:[#allocation2 + $0x64] sm:$0xf0]  ;;  %v4689_v9 = vld [vmem:[#allocation2 + $0x4c] sm:$0xf] }
  0x20   :  { %v3239_v7 = vor.u32 %v4688_v2, %v3236_v4  ;;  %v3243_v8 = vor.u32 %v4693_v6, %v3242_v5  ;;  %v3244_v10 = vld [vmem:[#allocation2 + $0x68] sm:$0xf0]  ;;  %v3202_v11 = vld [vmem:[#allocation2] sm:$0xf]  ;;  %v4680_v14 = vld [vmem:[#allocation2 + $0x4] sm:$0xf] }
  0x21   :  { %252 = vmatpush.bf16.msra.mxu0 %v3235_v3  ;;  %v3247_v12 = vor.u32 %v4689_v9, %v3244_v10  ;;  %v4684_v13 = vld [vmem:[#allocation2 + $0x1c] sm:$0xf0]  ;;  %v3204_v15 = vld [vmem:[#allocation2 + $0x20] sm:$0xf0]  ;;  %v3210_v18 = vld [vmem:[#allocation2 + $0x8] sm:$0xf] }
  0x22   :  { %265 = vmatpush.bf16.msra.mxu1 %v3239_v7  ;;  %278 = vmatpush.bf16.msra.mxu2 %v3243_v8  ;;  %v3203_v16 = vor.u32 %v4684_v13, %v3202_v11  ;;  %v3207_v17 = vor.u32 %v4680_v14, %v3204_v15  ;;  %v4685_v19 = vld [vmem:[#allocation2 + $0x24] sm:$0xf0]  ;;  %v4681_v20 = vld [vmem:[#allocation2 + $0xc] sm:$0xf]  ;;  %v3250_v24 = vld [vmem:[#allocation2 + $0x50] sm:$0xf] }
  0x23   :  { %291 = vmatpush.bf16.msra.mxu3 %v3247_v12  ;;  %v3211_v21 = vor.u32 %v4685_v19, %v3210_v18  ;;  %v3212_v22 = vld [vmem:[#allocation2 + $0x28] sm:$0xf0]  ;;  %v5313_v23 = vld [vmem:[%s5472_s0] sm:$0xf]  ;;  %v4694_v26 = vld [vmem:[#allocation2 + $0x6c] sm:$0xf0] }
  0x24   :  { %v3215_v25 = vor.u32 %v4681_v20, %v3212_v22  ;;  %v4690_v27 = vld [vmem:[#allocation2 + $0x54] sm:$0xf]  ;;  %v3251_v29 = vor.u32 %v4694_v26, %v3250_v24  ;;  %v3258_v31 = vld [vmem:[#allocation2 + $0x58] sm:$0xf]  ;;  %v4691_v33 = vld [vmem:[#allocation2 + $0x5c] sm:$0xf] }
  0x25   :  { %v3252_v28 = vld [vmem:[#allocation2 + $0x70] sm:$0xf0]  ;;  %253 = vmatpush.bf16.msra.mxu0 %v3203_v16  ;;  %v4695_v32 = vld [vmem:[#allocation2 + $0x74] sm:$0xf0]  ;;  %v3260_v35 = vld [vmem:[#allocation2 + $0x78] sm:$0xf0] }
  0x26   :  { %v3255_v30 = vor.u32 %v4690_v27, %v3252_v28  ;;  %266 = vmatpush.bf16.msra.mxu1 %v3207_v17  ;;  %279 = vmatpush.bf16.msra.mxu2 %v3211_v21  ;;  %v3259_v34 = vor.u32 %v4695_v32, %v3258_v31  ;;  %v3218_v36 = vld [vmem:[#allocation2 + $0x10] sm:$0xf]  ;;  %v3263_v38 = vor.u32 %v4691_v33, %v3260_v35  ;;  %v4682_v40 = vld [vmem:[#allocation2 + $0x14] sm:$0xf]  ;;  %v3226_v42 = vld [vmem:[#allocation2 + $0x18] sm:$0xf] }
  0x27   :  { %v4686_v37 = vld [vmem:[#allocation2 + $0x2c] sm:$0xf0]  ;;  %292 = vmatpush.bf16.msra.mxu3 %v3215_v25  ;;  %v3220_v41 = vld [vmem:[#allocation2 + $0x30] sm:$0xf0]  ;;  %v4687_v44 = vld [vmem:[#allocation2 + $0x34] sm:$0xf0] }
  0x28   :  { %v3219_v39 = vor.u32 %v4686_v37, %v3218_v36  ;;  %3264 = vmatmul.msk.bf16.vlgmr.msra.gmra.mxu0 %vm242_vm0, %v5313_v23  ;;  %v3223_v43 = vor.u32 %v4682_v40, %v3220_v41  ;;  %v4683_v45 = vld [vmem:[#allocation2 + $0x1c] sm:$0xf]  ;;  %v3386_v47 = vld [vmem:[#allocation4 + $0xe0] sm:$0xf]  ;;  %v4726_v48 = vld [vmem:[#allocation4 + $0xec] sm:$0xf0]  ;;  %v3227_v50 = vor.u32 %v4687_v44, %v3226_v42 }
  0x29   :  { %304 = vmatpush.bf16.msrb.mxu0 %v3251_v29  ;;  %v3228_v46 = vld [vmem:[#allocation2 + $0x38] sm:$0xf0]  ;;  %3265 = vmatmul.msk.bf16.vlgmr.msra.gmra.mxu1 %vm242_vm0, %v5313_v23  ;;  %v3514_v49 = vld [vmem:[#allocation4 + $0x1e0] sm:$0xf]  ;;  %v3387_v51 = vor.u32 %v4726_v48, %v3386_v47  ;;  %v4758_v52 = vld [vmem:[#allocation4 + $0x1ec] sm:$0xf0] }
  0x2a   :  { %317 = vmatpush.bf16.msrb.mxu1 %v3255_v30  ;;  %3266 = vmatmul.msk.bf16.vlgmr.msra.gmra.mxu2 %vm242_vm0, %v5313_v23  ;;  %v3370_v53 = vld [vmem:[#allocation4 + $0xc0] sm:$0xf]  ;;  %v4722_v54 = vld [vmem:[#allocation4 + $0xcc] sm:$0xf0]  ;;  %v3231_v55 = vor.u32 %v4683_v45, %v3228_v46  ;;  %v3515_v56 = vor.u32 %v4758_v52, %v3514_v49 }
  0x2b   :  { %3267 = vmatmul.msk.bf16.vlgmr.msra.gmra.mxu3 %vm242_vm0, %v5313_v23  ;;  %330 = vmatpush.bf16.msrb.mxu2 %v3259_v34  ;;  %v3498_v57 = vld [vmem:[#allocation4 + $0x1c0] sm:$0xf]  ;;  %v4754_v58 = vld [vmem:[#allocation4 + $0x1cc] sm:$0xf0]  ;;  %v3371_v60 = vor.u32 %v4722_v54, %v3370_v53 }
  0x2c   :  { %343 = vmatpush.bf16.msrb.mxu3 %v3263_v38  ;;  %v3642_v59 = vld [vmem:[#allocation4 + $0x2e0] sm:$0xf]  ;;  %v4790_v61 = vld [vmem:[#allocation4 + $0x2ec] sm:$0xf0]  ;;  %v3499_v0 = vor.u32 %v4754_v58, %v3498_v57 }
  0x2d   :  { %305 = vmatpush.bf16.msrb.mxu0 %v3219_v39  ;;  %v3770_v62 = vld [vmem:[#allocation4 + $0x3e0] sm:$0xf]  ;;  %v4822_v63 = vld [vmem:[#allocation4 + $0x3ec] sm:$0xf0]  ;;  %v3643_v1 = vor.u32 %v4790_v61, %v3642_v59 }
  0x2e   :  { %318 = vmatpush.bf16.msrb.mxu1 %v3223_v43  ;;  %v3771_v2 = vor.u32 %v4822_v63, %v3770_v62  ;;  %v3354_v3 = vld [vmem:[#allocation4 + $0xa0] sm:$0xf]  ;;  %v4718_v4 = vld [vmem:[#allocation4 + $0xac] sm:$0xf0] }
  0x2f   :  { %v3482_v5 = vld [vmem:[#allocation4 + $0x1a0] sm:$0xf]  ;;  %331 = vmatpush.bf16.msrb.mxu2 %v3227_v50  ;;  %v4750_v6 = vld [vmem:[#allocation4 + $0x1ac] sm:$0xf0]  ;;  %v3355_v12 = vor.u32 %v4718_v4, %v3354_v3 }
  0x30   :  { %v3626_v7 = vld [vmem:[#allocation4 + $0x2c0] sm:$0xf]  ;;  %v4786_v8 = vld [vmem:[#allocation4 + $0x2cc] sm:$0xf0]  ;;  %344 = vmatpush.bf16.msrb.mxu3 %v3231_v55  ;;  %v3483_v14 = vor.u32 %v4750_v6, %v3482_v5 }
  0x31   :  { %1920 = vmatpush.bf16.msra.mxu0 %v3387_v51  ;;  %v3627_v9 = vor.u32 %v4786_v8, %v3626_v7  ;;  %v3754_v10 = vld [vmem:[#allocation4 + $0x3c0] sm:$0xf]  ;;  %v4818_v11 = vld [vmem:[#allocation4 + $0x3cc] sm:$0xf0] }
  0x32   :  { %1933 = vmatpush.bf16.msra.mxu1 %v3515_v56  ;;  %v3755_v13 = vor.u32 %v4818_v11, %v3754_v10  ;;  %v3610_v15 = vld [vmem:[#allocation4 + $0x2a0] sm:$0xf]  ;;  %v4782_v16 = vld [vmem:[#allocation4 + $0x2ac] sm:$0xf0] }
  0x33   :  { %1946 = vmatpush.bf16.msra.mxu2 %v3643_v1  ;;  %v3738_v17 = vld [vmem:[#allocation4 + $0x3a0] sm:$0xf]  ;;  %v4814_v18 = vld [vmem:[#allocation4 + $0x3ac] sm:$0xf0]  ;;  %v3611_v22 = vor.u32 %v4782_v16, %v3610_v15 }
  0x34   :  { %1959 = vmatpush.bf16.msra.mxu3 %v3771_v2  ;;  %v3338_v19 = vld [vmem:[#allocation4 + $0x80] sm:$0xf]  ;;  %v4714_v20 = vld [vmem:[#allocation4 + $0x8c] sm:$0xf0]  ;;  %v3739_v25 = vor.u32 %v4814_v18, %v3738_v17 }
  0x35   :  { %1921 = vmatpush.bf16.msra.mxu0 %v3371_v60  ;;  %v3466_v21 = vld [vmem:[#allocation4 + $0x180] sm:$0xf]  ;;  %v4746_v24 = vld [vmem:[#allocation4 + $0x18c] sm:$0xf0]  ;;  %v3339_v30 = vor.u32 %v4714_v20, %v3338_v19 }
  0x36   :  { %1934 = vmatpush.bf16.msra.mxu1 %v3499_v0  ;;  %v3594_v26 = vld [vmem:[#allocation4 + $0x280] sm:$0xf]  ;;  %v4778_v27 = vld [vmem:[#allocation4 + $0x28c] sm:$0xf0]  ;;  %v3467_v31 = vor.u32 %v4746_v24, %v3466_v21 }
  0x37   :  { %1947 = vmatpush.bf16.msra.mxu2 %v3627_v9  ;;  %v3722_v28 = vld [vmem:[#allocation4 + $0x380] sm:$0xf]  ;;  %v4810_v29 = vld [vmem:[#allocation4 + $0x38c] sm:$0xf0]  ;;  %v3595_v35 = vor.u32 %v4778_v27, %v3594_v26 }
  0x38   :  { %1960 = vmatpush.bf16.msra.mxu3 %v3755_v13  ;;  %v3322_v32 = vld [vmem:[#allocation4 + $0x60] sm:$0xf]  ;;  %v4710_v33 = vld [vmem:[#allocation4 + $0x6c] sm:$0xf0]  ;;  %3268 = vmatmul.msk.bf16.vlgmr.msrb.gmra.mxu0 %vm242_vm0, %v5313_v23  ;;  %v3723_v37 = vor.u32 %v4810_v29, %v3722_v28 }
  0x39   :  { %1922 = vmatpush.bf16.msra.mxu0 %v3355_v12  ;;  %v3450_v34 = vld [vmem:[#allocation4 + $0x160] sm:$0xf]  ;;  %v4742_v36 = vld [vmem:[#allocation4 + $0x16c] sm:$0xf0]  ;;  %3269 = vmatmul.msk.bf16.vlgmr.msrb.gmra.mxu1 %vm242_vm0, %v5313_v23  ;;  %v3323_v42 = vor.u32 %v4710_v33, %v3322_v32 }
  0x3a   :  { %1935 = vmatpush.bf16.msra.mxu1 %v3483_v14  ;;  %v3578_v38 = vld [vmem:[#allocation4 + $0x260] sm:$0xf]  ;;  %v4774_v39 = vld [vmem:[#allocation4 + $0x26c] sm:$0xf0]  ;;  %3270 = vmatmul.msk.bf16.vlgmr.msrb.gmra.mxu2 %vm242_vm0, %v5313_v23  ;;  %v3451_v43 = vor.u32 %v4742_v36, %v3450_v34 }
  0x3b   :  { %1948 = vmatpush.bf16.msra.mxu2 %v3611_v22  ;;  %v3706_v40 = vld [vmem:[#allocation4 + $0x360] sm:$0xf]  ;;  %v4806_v41 = vld [vmem:[#allocation4 + $0x36c] sm:$0xf0]  ;;  %3271 = vmatmul.msk.bf16.vlgmr.msrb.gmra.mxu3 %vm242_vm0, %v5313_v23  ;;  %v3579_v47 = vor.u32 %v4774_v39, %v3578_v38 }
  0x3c   :  { %1961 = vmatpush.bf16.msra.mxu3 %v3739_v25  ;;  %v3306_v44 = vld [vmem:[#allocation4 + $0x40] sm:$0xf]  ;;  %v4706_v45 = vld [vmem:[#allocation4 + $0x4c] sm:$0xf0]  ;;  %v3707_v49 = vor.u32 %v4806_v41, %v3706_v40 }
  0x3d   :  { %1923 = vmatpush.bf16.msra.mxu0 %v3339_v30  ;;  %v3434_v46 = vld [vmem:[#allocation4 + $0x140] sm:$0xf]  ;;  %v4738_v48 = vld [vmem:[#allocation4 + $0x14c] sm:$0xf0]  ;;  %v3307_v54 = vor.u32 %v4706_v45, %v3306_v44 }
  0x3e   :  { %1936 = vmatpush.bf16.msra.mxu1 %v3467_v31  ;;  %v3562_v50 = vld [vmem:[#allocation4 + $0x240] sm:$0xf]  ;;  %v4770_v51 = vld [vmem:[#allocation4 + $0x24c] sm:$0xf0]  ;;  %v3435_v23 = vor.u32 %v4738_v48, %v3434_v46 }
  0x3f   :  { %1949 = vmatpush.bf16.msra.mxu2 %v3595_v35  ;;  %v3690_v52 = vld [vmem:[#allocation4 + $0x340] sm:$0xf]  ;;  %v4802_v53 = vld [vmem:[#allocation4 + $0x34c] sm:$0xf0]  ;;  %v3563_v58 = vor.u32 %v4770_v51, %v3562_v50 }
  0x40   :  { %1962 = vmatpush.bf16.msra.mxu3 %v3723_v37  ;;  %v3290_v55 = vld [vmem:[#allocation4 + $0x20] sm:$0xf]  ;;  %v4702_v56 = vld [vmem:[#allocation4 + $0x2c] sm:$0xf0]  ;;  %v3691_v60 = vor.u32 %v4802_v53, %v3690_v52 }
  0x41   :  { %1924 = vmatpush.bf16.msra.mxu0 %v3323_v42  ;;  %v3418_v57 = vld [vmem:[#allocation4 + $0x120] sm:$0xf]  ;;  %v4734_v59 = vld [vmem:[#allocation4 + $0x12c] sm:$0xf0]  ;;  %v3291_v1 = vor.u32 %v4702_v56, %v3290_v55 }
  0x42   :  { %1937 = vmatpush.bf16.msra.mxu1 %v3451_v43  ;;  %v3546_v61 = vld [vmem:[#allocation4 + $0x220] sm:$0xf]  ;;  %v4766_v62 = vld [vmem:[#allocation4 + $0x22c] sm:$0xf0]  ;;  %v3419_v4 = vor.u32 %v4734_v59, %v3418_v57 }
  0x43   :  { %1950 = vmatpush.bf16.msra.mxu2 %v3579_v47  ;;  %v3674_v63 = vld [vmem:[#allocation4 + $0x320] sm:$0xf]  ;;  %v4798_v0 = vld [vmem:[#allocation4 + $0x32c] sm:$0xf0]  ;;  %v3547_v8 = vor.u32 %v4766_v62, %v3546_v61 }
  0x44   :  { %1963 = vmatpush.bf16.msra.mxu3 %v3707_v49  ;;  %v3274_v2 = vld [vmem:[#allocation4] sm:$0xf]  ;;  %v4698_v3 = vld [vmem:[#allocation4 + $0xc] sm:$0xf0]  ;;  %v3675_v12 = vor.u32 %v4798_v0, %v3674_v63 }
  0x45   :  { %1925 = vmatpush.bf16.msra.mxu0 %v3307_v54  ;;  %v3402_v5 = vld [vmem:[#allocation4 + $0x100] sm:$0xf]  ;;  %v4730_v6 = vld [vmem:[#allocation4 + $0x10c] sm:$0xf0]  ;;  %v3275_v16 = vor.u32 %v4698_v3, %v3274_v2 }
  0x46   :  { %1938 = vmatpush.bf16.msra.mxu1 %v3435_v23  ;;  %v3898_v7 = vld [vmem:[#allocation4 + $0x4e0] sm:$0xf]  ;;  %v4854_v9 = vld [vmem:[#allocation4 + $0x4ec] sm:$0xf0]  ;;  %v3403_v20 = vor.u32 %v4730_v6, %v3402_v5 }
  0x47   :  { %1951 = vmatpush.bf16.msra.mxu2 %v3563_v58  ;;  %v4026_v10 = vld [vmem:[#allocation4 + $0x5e0] sm:$0xf]  ;;  %v4886_v11 = vld [vmem:[#allocation4 + $0x5ec] sm:$0xf0]  ;;  %v3899_v21 = vor.u32 %v4854_v9, %v3898_v7 }
  0x48   :  { %1964 = vmatpush.bf16.msra.mxu3 %v3691_v60  ;;  %v3530_v13 = vld [vmem:[#allocation4 + $0x200] sm:$0xf]  ;;  %v4762_v14 = vld [vmem:[#allocation4 + $0x20c] sm:$0xf0]  ;;  %v4027_v25 = vor.u32 %v4886_v11, %v4026_v10 }
  0x49   :  { %v3658_v15 = vld [vmem:[#allocation4 + $0x300] sm:$0xf]  ;;  %1926 = vmatpush.bf16.msra.mxu0 %v3291_v1  ;;  %v4794_v17 = vld [vmem:[#allocation4 + $0x30c] sm:$0xf0]  ;;  %v3531_v28 = vor.u32 %v4762_v14, %v3530_v13 }
  0x4a   :  { %v4154_v18 = vld [vmem:[#allocation4 + $0x6e0] sm:$0xf]  ;;  %v4918_v19 = vld [vmem:[#allocation4 + $0x6ec] sm:$0xf0]  ;;  %1939 = vmatpush.bf16.msra.mxu1 %v3419_v4  ;;  %v3659_v31 = vor.u32 %v4794_v17, %v3658_v15 }
  0x4b   :  { %1952 = vmatpush.bf16.msra.mxu2 %v3547_v8  ;;  %v4282_v22 = vld [vmem:[#allocation4 + $0x7e0] sm:$0xf]  ;;  %v4950_v24 = vld [vmem:[#allocation4 + $0x7ec] sm:$0xf0]  ;;  %v4155_v32 = vor.u32 %v4918_v19, %v4154_v18 }
  0x4c   :  { %1965 = vmatpush.bf16.msra.mxu3 %v3675_v12  ;;  %v3882_v26 = vld [vmem:[#allocation4 + $0x4c0] sm:$0xf]  ;;  %v4850_v27 = vld [vmem:[#allocation4 + $0x4cc] sm:$0xf0]  ;;  %v4283_v34 = vor.u32 %v4950_v24, %v4282_v22 }
  0x4d   :  { %v4010_v29 = vld [vmem:[#allocation4 + $0x5c0] sm:$0xf]  ;;  %v4882_v30 = vld [vmem:[#allocation4 + $0x5cc] sm:$0xf0]  ;;  %1927 = vmatpush.bf16.msra.mxu0 %v3275_v16  ;;  %v3883_v38 = vor.u32 %v4850_v27, %v3882_v26 }
  0x4e   :  { %v4138_v33 = vld [vmem:[#allocation4 + $0x6c0] sm:$0xf]  ;;  %v4914_v36 = vld [vmem:[#allocation4 + $0x6cc] sm:$0xf0]  ;;  %1940 = vmatpush.bf16.msra.mxu1 %v3403_v20  ;;  %v4011_v40 = vor.u32 %v4882_v30, %v4010_v29 }
  0x4f   :  { %v3866_v35 = vld [vmem:[#allocation4 + $0x4a0] sm:$0xf]  ;;  %v4946_v39 = vld [vmem:[#allocation4 + $0x7cc] sm:$0xf0]  ;;  %1953 = vmatpush.bf16.msra.mxu2 %v3531_v28  ;;  %v4139_v44 = vor.u32 %v4914_v36, %v4138_v33 }
  0x50   :  { %v4266_v37 = vld [vmem:[#allocation4 + $0x7c0] sm:$0xf]  ;;  %v4846_v41 = vld [vmem:[#allocation4 + $0x4ac] sm:$0xf0]  ;;  %1966 = vmatpush.bf16.msra.mxu3 %v3659_v31 }
  0x51   :  { %1972 = vmatpush.bf16.msrb.mxu0 %v3899_v21  ;;  %v3994_v42 = vld [vmem:[#allocation4 + $0x5a0] sm:$0xf]  ;;  %v4878_v43 = vld [vmem:[#allocation4 + $0x5ac] sm:$0xf0]  ;;  %v4267_v45 = vor.u32 %v4946_v39, %v4266_v37  ;;  %v3867_v48 = vor.u32 %v4846_v41, %v3866_v35 }
  0x52   :  { %1985 = vmatpush.bf16.msrb.mxu1 %v4027_v25  ;;  %v4122_v46 = vld [vmem:[#allocation4 + $0x6a0] sm:$0xf]  ;;  %v4910_v47 = vld [vmem:[#allocation4 + $0x6ac] sm:$0xf0]  ;;  %v3995_v51 = vor.u32 %v4878_v43, %v3994_v42 }
  0x53   :  { %1998 = vmatpush.bf16.msrb.mxu2 %v4155_v32  ;;  %v4250_v49 = vld [vmem:[#allocation4 + $0x7a0] sm:$0xf]  ;;  %v4942_v50 = vld [vmem:[#allocation4 + $0x7ac] sm:$0xf0]  ;;  %v4123_v55 = vor.u32 %v4910_v47, %v4122_v46 }
  0x54   :  { %2011 = vmatpush.bf16.msrb.mxu3 %v4283_v34  ;;  %v3850_v52 = vld [vmem:[#allocation4 + $0x480] sm:$0xf]  ;;  %v4842_v53 = vld [vmem:[#allocation4 + $0x48c] sm:$0xf0]  ;;  %v4251_v56 = vor.u32 %v4942_v50, %v4250_v49  ;;  %v5334_v50 = vld [vmem:[%s5480_s8] sm:$0xff] }
  0x55   :  { %1973 = vmatpush.bf16.msrb.mxu0 %v3883_v38  ;;  %v3978_v54 = vld [vmem:[#allocation4 + $0x580] sm:$0xf]  ;;  %v4874_v23 = vld [vmem:[#allocation4 + $0x58c] sm:$0xf0]  ;;  %v3851_v59 = vor.u32 %v4842_v53, %v3850_v52  ;;  %v147_v52 = vperm.slane %v5334_v50, 1 }
  0x56   :  { %1986 = vmatpush.bf16.msrb.mxu1 %v4011_v40  ;;  %v4106_v57 = vld [vmem:[#allocation4 + $0x680] sm:$0xf]  ;;  %v4906_v58 = vld [vmem:[#allocation4 + $0x68c] sm:$0xf0]  ;;  %v3979_v62 = vor.u32 %v4874_v23, %v3978_v54 }
  0x57   :  { %1999 = vmatpush.bf16.msrb.mxu2 %v4139_v44  ;;  %v4234_v60 = vld [vmem:[#allocation4 + $0x780] sm:$0xf]  ;;  %v4938_v61 = vld [vmem:[#allocation4 + $0x78c] sm:$0xf0]  ;;  %v4107_v3 = vor.u32 %v4906_v58, %v4106_v57  ;;  %v4724_v58 = vld [vmem:[#allocation4 + $0xe4] sm:$0xf] }
  0x58   :  { %2012 = vmatpush.bf16.msrb.mxu3 %v4267_v45  ;;  %v3834_v63 = vld [vmem:[#allocation4 + $0x460] sm:$0xf]  ;;  %v4838_v0 = vld [vmem:[#allocation4 + $0x46c] sm:$0xf0]  ;;  %v4235_v4 = vor.u32 %v4938_v61, %v4234_v60  ;;  %v4756_v61 = vld [vmem:[#allocation4 + $0x1e4] sm:$0xf] }
  0x59   :  { %1974 = vmatpush.bf16.msrb.mxu0 %v3867_v48  ;;  %v3962_v1 = vld [vmem:[#allocation4 + $0x560] sm:$0xf]  ;;  %v4870_v2 = vld [vmem:[#allocation4 + $0x56c] sm:$0xf0]  ;;  %v3835_v5 = vor.u32 %v4838_v0, %v3834_v63  ;;  %v149_v0 = vperm.slane %v5334_v50, 3 }
  0x5a   :  { %1987 = vmatpush.bf16.msrb.mxu1 %v3995_v51  ;;  %v3963_v6 = vor.u32 %v4870_v2, %v3962_v1  ;;  %v3818_v7 = vld [vmem:[#allocation4 + $0x440] sm:$0xf]  ;;  %v4834_v8 = vld [vmem:[#allocation4 + $0x44c] sm:$0xf0]  ;;  %v146_v51 = vperm.slane %v5334_v50, 0 }
  0x5b   :  { %2000 = vmatpush.bf16.msrb.mxu2 %v4123_v55  ;;  %v3946_v9 = vld [vmem:[#allocation4 + $0x540] sm:$0xf]  ;;  %v3819_v10 = vor.u32 %v4834_v8, %v3818_v7  ;;  %v4866_v11 = vld [vmem:[#allocation4 + $0x54c] sm:$0xf0]  ;;  %v3372_v7 = vld [vmem:[#allocation4 + $0xd0] sm:$0xf0] }
  0x5c   :  { %2013 = vmatpush.bf16.msrb.mxu3 %v4251_v56  ;;  %v3947_v12 = vor.u32 %v4866_v11, %v3946_v9  ;;  %v4090_v13 = vld [vmem:[#allocation4 + $0x660] sm:$0xf]  ;;  %v4902_v14 = vld [vmem:[#allocation4 + $0x66c] sm:$0xf0]  ;;  %v148_v56 = vperm.slane %v5334_v50, 2 }
  0x5d   :  { %1975 = vmatpush.bf16.msrb.mxu0 %v3851_v59  ;;  %v4091_v15 = vor.u32 %v4902_v14, %v4090_v13  ;;  %v4218_v16 = vld [vmem:[#allocation4 + $0x760] sm:$0xf]  ;;  %v4934_v17 = vld [vmem:[#allocation4 + $0x76c] sm:$0xf0]  ;;  %v3388_v59 = vld [vmem:[#allocation4 + $0xf0] sm:$0xf0] }
  0x5e   :  { %1988 = vmatpush.bf16.msrb.mxu1 %v3979_v62  ;;  %v4219_v18 = vor.u32 %v4934_v17, %v4218_v16  ;;  %v3802_v19 = vld [vmem:[#allocation4 + $0x420] sm:$0xf]  ;;  %v4830_v20 = vld [vmem:[#allocation4 + $0x42c] sm:$0xf0]  ;;  %v3516_v62 = vld [vmem:[#allocation4 + $0x1f0] sm:$0xf0]  ;;  %v3391_v2 = vor.u32 %v4724_v58, %v3388_v59 }
  0x5f   :  { %2001 = vmatpush.bf16.msrb.mxu2 %v4107_v3  ;;  %v3930_v21 = vld [vmem:[#allocation4 + $0x520] sm:$0xf]  ;;  %v3803_v22 = vor.u32 %v4830_v20, %v3802_v19  ;;  %v4862_v24 = vld [vmem:[#allocation4 + $0x52c] sm:$0xf0]  ;;  %v3500_v13 = vld [vmem:[#allocation4 + $0x1d0] sm:$0xf0] }
  0x60   :  { %2014 = vmatpush.bf16.msrb.mxu3 %v4235_v4  ;;  %v3931_v25 = vor.u32 %v4862_v24, %v3930_v21  ;;  %v4074_v26 = vld [vmem:[#allocation4 + $0x640] sm:$0xf]  ;;  %v4898_v27 = vld [vmem:[#allocation4 + $0x64c] sm:$0xf0]  ;;  %v4788_v16 = vld [vmem:[#allocation4 + $0x2e4] sm:$0xf] }
  0x61   :  { %1976 = vmatpush.bf16.msrb.mxu0 %v3835_v5  ;;  %v4202_v28 = vld [vmem:[#allocation4 + $0x740] sm:$0xf]  ;;  %v4075_v29 = vor.u32 %v4898_v27, %v4074_v26  ;;  %v4930_v30 = vld [vmem:[#allocation4 + $0x74c] sm:$0xf0]  ;;  %v3519_v5 = vor.u32 %v4756_v61, %v3516_v62  ;;  %v3644_v17 = vld [vmem:[#allocation4 + $0x2f0] sm:$0xf0] }
  0x62   :  { %1989 = vmatpush.bf16.msrb.mxu1 %v3963_v6  ;;  %v4203_v31 = vor.u32 %v4930_v30, %v4202_v28  ;;  %v3786_v32 = vld [vmem:[#allocation4 + $0x400] sm:$0xf]  ;;  %v4826_v33 = vld [vmem:[#allocation4 + $0x40c] sm:$0xf0]  ;;  %v4720_v6 = vld [vmem:[#allocation4 + $0xc4] sm:$0xf] }
  0x63   :  { %2002 = vmatpush.bf16.msrb.mxu2 %v4091_v15  ;;  %v3787_v34 = vor.u32 %v4826_v33, %v3786_v32  ;;  %v3914_v35 = vld [vmem:[#allocation4 + $0x500] sm:$0xf]  ;;  %v4858_v36 = vld [vmem:[#allocation4 + $0x50c] sm:$0xf0]  ;;  %v3375_v19 = vor.u32 %v4720_v6, %v3372_v7  ;;  %v4820_v20 = vld [vmem:[#allocation4 + $0x3e4] sm:$0xf] }
  0x64   :  { %2015 = vmatpush.bf16.msrb.mxu3 %v4219_v18  ;;  %v3915_v37 = vor.u32 %v4858_v36, %v3914_v35  ;;  %v4058_v38 = vld [vmem:[#allocation4 + $0x620] sm:$0xf]  ;;  %v4894_v39 = vld [vmem:[#allocation4 + $0x62c] sm:$0xf0]  ;;  %v3772_v21 = vld [vmem:[#allocation4 + $0x3f0] sm:$0xf0] }
  0x65   :  { %1977 = vmatpush.bf16.msrb.mxu0 %v3819_v10  ;;  %v4186_v40 = vld [vmem:[#allocation4 + $0x720] sm:$0xf]  ;;  %v4059_v41 = vor.u32 %v4894_v39, %v4058_v38  ;;  %v4926_v42 = vld [vmem:[#allocation4 + $0x72c] sm:$0xf0]  ;;  %v3356_v26 = vld [vmem:[#allocation4 + $0xb0] sm:$0xf0]  ;;  %v3775_v35 = vor.u32 %v4820_v20, %v3772_v21 }
  0x66   :  { %1990 = vmatpush.bf16.msrb.mxu1 %v3947_v12  ;;  %v4187_v43 = vor.u32 %v4926_v42, %v4186_v40  ;;  %v4042_v44 = vld [vmem:[#allocation4 + $0x600] sm:$0xf]  ;;  %v4890_v45 = vld [vmem:[#allocation4 + $0x60c] sm:$0xf0]  ;;  %v4752_v12 = vld [vmem:[#allocation4 + $0x1c4] sm:$0xf] }
  0x67   :  { %2003 = vmatpush.bf16.msrb.mxu2 %v4075_v29  ;;  %v4043_v46 = vor.u32 %v4890_v45, %v4042_v44  ;;  %v4170_v47 = vld [vmem:[#allocation4 + $0x700] sm:$0xf]  ;;  %v4922_v48 = vld [vmem:[#allocation4 + $0x70c] sm:$0xf0]  ;;  %v3503_v24 = vor.u32 %v4752_v12, %v3500_v13  ;;  %v4748_v28 = vld [vmem:[#allocation4 + $0x1a4] sm:$0xf] }
  0x68   :  { %2016 = vmatpush.bf16.msrb.mxu3 %v4203_v31  ;;  %v4171_v49 = vor.u32 %v4922_v48, %v4170_v47  ;;  %v3484_v29 = vld [vmem:[#allocation4 + $0x1b0] sm:$0xf0]  ;;  %v3647_v31 = vor.u32 %v4788_v16, %v3644_v17  ;;  %v150_v32 = vperm.slane %v5334_v50, 4  ;;  %v151_v33 = vperm.slane %v5334_v50, 5  ;;  %v4816_v39 = vld [vmem:[#allocation4 + $0x3c4] sm:$0xf] }
  0x69   :  { %1978 = vmatpush.bf16.msrb.mxu0 %v3803_v22  ;;  %v3628_v38 = vld [vmem:[#allocation4 + $0x2d0] sm:$0xf0]  ;;  %v3487_v42 = vor.u32 %v4748_v28, %v3484_v29  ;;  %v4712_v44 = vld [vmem:[#allocation4 + $0x84] sm:$0xf]  ;;  %v152_v58 = vperm.slane %v5334_v50, 6  ;;  %v153_v6 = vperm.slane %v5334_v50, 7 }
  0x6a   :  { %1991 = vmatpush.bf16.msrb.mxu1 %v3931_v25  ;;  %v4716_v25 = vld [vmem:[#allocation4 + $0xa4] sm:$0xf]  ;;  %v3340_v45 = vld [vmem:[#allocation4 + $0x90] sm:$0xf0] }
  0x6b   :  { %2004 = vmatpush.bf16.msrb.mxu2 %v4059_v41  ;;  %v3359_v36 = vor.u32 %v4716_v25, %v3356_v26  ;;  %v4744_v48 = vld [vmem:[#allocation4 + $0x184] sm:$0xf]  ;;  %v3596_v12 = vld [vmem:[#allocation4 + $0x290] sm:$0xf0] }
  0x6c   :  { %2017 = vmatpush.bf16.msrb.mxu3 %v4187_v43  ;;  %v3756_v43 = vld [vmem:[#allocation4 + $0x3d0] sm:$0xf0]  ;;  %v4812_v59 = vld [vmem:[#allocation4 + $0x3a4] sm:$0xf] }
  0x6d   :  { %1979 = vmatpush.bf16.msrb.mxu0 %v3787_v34  ;;  %v4808_v17 = vld [vmem:[#allocation4 + $0x384] sm:$0xf]  ;;  %v3436_v25 = vld [vmem:[#allocation4 + $0x150] sm:$0xf0] }
  0x6e   :  { %1992 = vmatpush.bf16.msrb.mxu1 %v3915_v37  ;;  %v4784_v37 = vld [vmem:[#allocation4 + $0x2c4] sm:$0xf] }
  0x6f   :  { %2005 = vmatpush.bf16.msrb.mxu2 %v4043_v46  ;;  %v4772_v29 = vld [vmem:[#allocation4 + $0x264] sm:$0xf] }
  0x70   :  { %2018 = vmatpush.bf16.msrb.mxu3 %v4171_v49  ;;  %v3468_v49 = vld [vmem:[#allocation4 + $0x190] sm:$0xf0] }
  0x71   :  { %v3471_v62 = vor.u32 %v4744_v48, %v3468_v49 }
  0xa5   :  { %v255_v53 = vpop.f32.mrf.mxu0 }
  0xa6   :  { %v256_v54 = vadd.f32 %v255_v53, %v146_v51  ;;  %v268_v23 = vpop.f32.mrf.mxu1  ;;  %v3631_v53 = vor.u32 %v4784_v37, %v3628_v38 }
  0xa7   :  { %v269_v55 = vadd.f32 %v268_v23, %v147_v52  ;;  %v3612_v23 = vld [vmem:[#allocation4 + $0x2b0] sm:$0xf0] }
  0xa8   :  { %v350_v57 = vmul.f32 0.1, %v256_v54 }
  0xa9   :  { %v351_v60 = vmul.f32 0.1, %v269_v55 }
  0xaa   :  { %v358_v63 = vmax.f32 %v256_v54, %v350_v57  ;;  %v4780_v54 = vld [vmem:[#allocation4 + $0x2a4] sm:$0xf]  ;;  %v3343_v57 = vor.u32 %v4712_v44, %v3340_v45  ;;  %v3420_v45 = vld [vmem:[#allocation4 + $0x130] sm:$0xf0] }
  0xab   :  { %v359_v1 = vmax.f32 %v269_v55, %v351_v60  ;;  %v3740_v60 = vld [vmem:[#allocation4 + $0x3b0] sm:$0xf0]  ;;  %v3615_v7 = vor.u32 %v4780_v54, %v3612_v23  ;;  %v4732_v44 = vld [vmem:[#allocation4 + $0x124] sm:$0xf] }
  0xac   :  { %v5340_v3 = vpack.c.bf16 %v358_v63, %v358_v63  ;;  %v4708_v63 = vld [vmem:[#allocation4 + $0x64] sm:$0xf] }
  0xad   :  { %v281_v4 = vpop.f32.mrf.mxu2  ;;  %v5342_v8 = vpack.c.bf16 %v359_v1, %v359_v1  ;;  %v257_v11 = vpop.f32.mrf.mxu0 }
  0xae   :  { %v282_v9 = vadd.f32 %v281_v4, %v148_v56  ;;  %v294_v10 = vpop.f32.mrf.mxu3  ;;  %v270_v15 = vpop.f32.mrf.mxu1  ;;  %1928 = vmatmul.bf16.vlgmr.msra.gmra.mxu0 %v5340_v3  ;;  %v3759_v56 = vor.u32 %v4816_v39, %v3756_v43  ;;  %v3452_v4 = vld [vmem:[#allocation4 + $0x170] sm:$0xf0]  ;;  %v4776_v11 = vld [vmem:[#allocation4 + $0x284] sm:$0xf] }
  0xaf   :  { %v295_v14 = vadd.f32 %v294_v10, %v149_v0  ;;  %1941 = vmatmul.bf16.vlgmr.msra.gmra.mxu1 %v5342_v8  ;;  %2024 = vmatpush.bf16.msra.mxu0 %v3391_v2  ;;  %v3324_v0 = vld [vmem:[#allocation4 + $0x70] sm:$0xf0]  ;;  %v4740_v2 = vld [vmem:[#allocation4 + $0x164] sm:$0xf]  ;;  %v3743_v10 = vor.u32 %v4812_v59, %v3740_v60  ;;  %v3599_v28 = vor.u32 %v4776_v11, %v3596_v12 }
  0xb0   :  { %v352_v18 = vmul.f32 0.1, %v282_v9  ;;  %2037 = vmatpush.bf16.msra.mxu1 %v3519_v5  ;;  %v3327_v15 = vor.u32 %v4708_v63, %v3324_v0  ;;  %v3455_v16 = vor.u32 %v4740_v2, %v3452_v4  ;;  %v3708_v39 = vld [vmem:[#allocation4 + $0x370] sm:$0xf0]  ;;  %v4852_v63 = vld [vmem:[#allocation4 + $0x4e4] sm:$0xf] }
  0xb1   :  { %v353_v22 = vmul.f32 0.1, %v295_v14  ;;  %v3292_v43 = vld [vmem:[#allocation4 + $0x30] sm:$0xf0]  ;;  %v4884_v2 = vld [vmem:[#allocation4 + $0x5e4] sm:$0xf] }
  0xb2   :  { %v360_v27 = vmax.f32 %v282_v9, %v352_v18  ;;  %v3724_v18 = vld [vmem:[#allocation4 + $0x390] sm:$0xf0]  ;;  %v4796_v11 = vld [vmem:[#allocation4 + $0x324] sm:$0xf] }
  0xb3   :  { %v361_v30 = vmax.f32 %v295_v14, %v353_v22  ;;  %2025 = vmatpush.bf16.msra.mxu0 %v3375_v19  ;;  %v4704_v19 = vld [vmem:[#allocation4 + $0x44] sm:$0xf]  ;;  %v3308_v22 = vld [vmem:[#allocation4 + $0x50] sm:$0xf0] }
  0xb4   :  { %v5348_v34 = vpack.c.bf16 %v360_v27, %v360_v27  ;;  %2038 = vmatpush.bf16.msra.mxu1 %v3503_v24  ;;  %v4736_v24 = vld [vmem:[#allocation4 + $0x144] sm:$0xf]  ;;  %v3311_v37 = vor.u32 %v4704_v19, %v3308_v22  ;;  %v3276_v59 = vld [vmem:[#allocation4 + $0x10] sm:$0xf0] }
  0xb5   :  { %v5350_v40 = vpack.c.bf16 %v361_v30, %v361_v30  ;;  %v283_v41 = vpop.f32.mrf.mxu2  ;;  %v307_v47 = vpop.f32.mrf.mxu0  ;;  %v3439_v38 = vor.u32 %v4736_v24, %v3436_v25  ;;  %v4028_v4 = vld [vmem:[#allocation4 + $0x5f0] sm:$0xf0]  ;;  %v4880_v19 = vld [vmem:[#allocation4 + $0x5c4] sm:$0xf] }
  0xb6   :  { %v296_v46 = vpop.f32.mrf.mxu3  ;;  %1954 = vmatmul.bf16.vlgmr.msra.gmra.mxu2 %v5348_v34  ;;  %v308_v51 = vadd.f32 %v307_v47, %v150_v32  ;;  %v320_v52 = vpop.f32.mrf.mxu1  ;;  %v3727_v32 = vor.u32 %v4808_v17, %v3724_v18  ;;  %v4700_v41 = vld [vmem:[#allocation4 + $0x24] sm:$0xf]  ;;  %v3676_v12 = vld [vmem:[#allocation4 + $0x330] sm:$0xf0] }
  0xb7   :  { %1967 = vmatmul.bf16.vlgmr.msra.gmra.mxu3 %v5350_v40  ;;  %2050 = vmatpush.bf16.msra.mxu2 %v3647_v31  ;;  %v321_v55 = vadd.f32 %v320_v52, %v151_v33  ;;  %v3580_v33 = vld [vmem:[#allocation4 + $0x270] sm:$0xf0]  ;;  %v3295_v23 = vor.u32 %v4700_v41, %v3292_v43  ;;  %v4760_v22 = vld [vmem:[#allocation4 + $0x204] sm:$0xf] }
  0xb8   :  { %2063 = vmatpush.bf16.msra.mxu3 %v3775_v35  ;;  %2026 = vmatpush.bf16.msra.mxu0 %v3359_v36  ;;  %v354_v61 = vmul.f32 0.1, %v308_v51  ;;  %v4804_v35 = vld [vmem:[#allocation4 + $0x364] sm:$0xf]  ;;  %v3583_v47 = vor.u32 %v4772_v29, %v3580_v33  ;;  %v3564_v52 = vld [vmem:[#allocation4 + $0x250] sm:$0xf0] }
  0xb9   :  { %2039 = vmatpush.bf16.msra.mxu1 %v3487_v42  ;;  %v355_v1 = vmul.f32 0.1, %v321_v55  ;;  %v3711_v49 = vor.u32 %v4804_v35, %v3708_v39  ;;  %v3884_v18 = vld [vmem:[#allocation4 + $0x4d0] sm:$0xf0]  ;;  %v4792_v25 = vld [vmem:[#allocation4 + $0x304] sm:$0xf] }
  0xba   :  { %v362_v5 = vmax.f32 %v308_v51, %v354_v61  ;;  %v4768_v51 = vld [vmem:[#allocation4 + $0x244] sm:$0xf]  ;;  %v3532_v24 = vld [vmem:[#allocation4 + $0x210] sm:$0xf0] }
  0xbb   :  { %2051 = vmatpush.bf16.msra.mxu2 %v3631_v53  ;;  %v363_v9 = vmax.f32 %v321_v55, %v355_v1  ;;  %v4800_v53 = vld [vmem:[#allocation4 + $0x344] sm:$0xf]  ;;  %v3423_v55 = vor.u32 %v4732_v44, %v3420_v45  ;;  %v3567_v0 = vor.u32 %v4768_v51, %v3564_v52  ;;  %v3900_v1 = vld [vmem:[#allocation4 + $0x4f0] sm:$0xf0]  ;;  %v3535_v35 = vor.u32 %v4760_v22, %v3532_v24 }
  0xbc   :  { %2064 = vmatpush.bf16.msra.mxu3 %v3759_v56  ;;  %2027 = vmatpush.bf16.msra.mxu0 %v3343_v57  ;;  %v5356_v13 = vpack.c.bf16 %v362_v5, %v362_v5  ;;  %v3692_v57 = vld [vmem:[#allocation4 + $0x350] sm:$0xf0]  ;;  %v4728_v61 = vld [vmem:[#allocation4 + $0x104] sm:$0xf] }
  0xbd   :  { %2040 = vmatpush.bf16.msra.mxu1 %v3471_v62  ;;  %v333_v14 = vpop.f32.mrf.mxu2  ;;  %v5358_v20 = vpack.c.bf16 %v363_v9, %v363_v9  ;;  %v309_v26 = vpop.f32.mrf.mxu0  ;;  %v3404_v62 = vld [vmem:[#allocation4 + $0x110] sm:$0xf0]  ;;  %v3695_v5 = vor.u32 %v4800_v53, %v3692_v57  ;;  %v4844_v33 = vld [vmem:[#allocation4 + $0x4a4] sm:$0xf] }
  0xbe   :  { %v334_v21 = vadd.f32 %v333_v14, %v152_v58  ;;  %v346_v50 = vpop.f32.mrf.mxu3  ;;  %1980 = vmatmul.bf16.vlgmr.msrb.gmra.mxu0 %v5356_v13  ;;  %v322_v30 = vpop.f32.mrf.mxu1  ;;  %v4696_v58 = vld [vmem:[#allocation4 + $0x4] sm:$0xf]  ;;  %v3903_v14 = vor.u32 %v4852_v63, %v3900_v1  ;;  %v3660_v26 = vld [vmem:[#allocation4 + $0x310] sm:$0xf0] }
  0xbf   :  { %v347_v27 = vadd.f32 %v346_v50, %v153_v6  ;;  %2052 = vmatpush.bf16.msra.mxu2 %v3615_v7  ;;  %1993 = vmatmul.bf16.vlgmr.msrb.gmra.mxu1 %v5358_v20  ;;  %v4764_v6 = vld [vmem:[#allocation4 + $0x224] sm:$0xf]  ;;  %v3548_v7 = vld [vmem:[#allocation4 + $0x230] sm:$0xf0]  ;;  %v3279_v9 = vor.u32 %v4696_v58, %v3276_v59  ;;  %v3679_v50 = vor.u32 %v4796_v11, %v3676_v12 }
  0xc0   :  { %v356_v31 = vmul.f32 0.1, %v334_v21  ;;  %2065 = vmatpush.bf16.msra.mxu3 %v3743_v10  ;;  %2028 = vmatpush.bf16.msra.mxu0 %v3327_v15  ;;  %v3407_v10 = vor.u32 %v4728_v61, %v3404_v62  ;;  %v4031_v15 = vor.u32 %v4884_v2, %v4028_v4  ;;  %v3551_v17 = vor.u32 %v4764_v6, %v3548_v7  ;;  %v4912_v43 = vld [vmem:[#allocation4 + $0x6c4] sm:$0xf]  ;;  %v4140_v44 = vld [vmem:[#allocation4 + $0x6d0] sm:$0xf0] }
  0xc1   :  { %v357_v36 = vmul.f32 0.1, %v347_v27  ;;  %2041 = vmatpush.bf16.msra.mxu1 %v3455_v16  ;;  %v4848_v16 = vld [vmem:[#allocation4 + $0x4c4] sm:$0xf]  ;;  %v3663_v39 = vor.u32 %v4792_v25, %v3660_v26  ;;  %v3852_v52 = vld [vmem:[#allocation4 + $0x490] sm:$0xf0] }
  0xc2   :  { %v364_v42 = vmax.f32 %v334_v21, %v356_v31  ;;  %v4012_v21 = vld [vmem:[#allocation4 + $0x5d0] sm:$0xf0]  ;;  %v3887_v29 = vor.u32 %v4848_v16, %v3884_v18  ;;  %v4948_v31 = vld [vmem:[#allocation4 + $0x7e4] sm:$0xf] }
  0xc3   :  { %v365_v46 = vmax.f32 %v347_v27, %v357_v36  ;;  %2053 = vmatpush.bf16.msra.mxu2 %v3599_v28  ;;  %v4916_v27 = vld [vmem:[#allocation4 + $0x6e4] sm:$0xf]  ;;  %v4156_v28 = vld [vmem:[#allocation4 + $0x6f0] sm:$0xf0]  ;;  %v4015_v30 = vor.u32 %v4880_v19, %v4012_v21 }
  0xc4   :  { %v5362_v48 = vpack.c.bf16 %v364_v42, %v364_v42  ;;  %2066 = vmatpush.bf16.msra.mxu3 %v3727_v32  ;;  %2029 = vmatpush.bf16.msra.mxu0 %v3311_v37  ;;  %v4284_v32 = vld [vmem:[#allocation4 + $0x7f0] sm:$0xf0]  ;;  %v4876_v37 = vld [vmem:[#allocation4 + $0x5a4] sm:$0xf]  ;;  %v4159_v41 = vor.u32 %v4916_v27, %v4156_v28 }
  0xc5   :  { %v5364_v54 = vpack.c.bf16 %v365_v46, %v365_v46  ;;  %2042 = vmatpush.bf16.msra.mxu1 %v3439_v38  ;;  %v335_v56 = vpop.f32.mrf.mxu2  ;;  %v3868_v36 = vld [vmem:[#allocation4 + $0x4b0] sm:$0xf0]  ;;  %v4287_v42 = vor.u32 %v4948_v31, %v4284_v32  ;;  %v4840_v51 = vld [vmem:[#allocation4 + $0x484] sm:$0xf] }
  0xc6   :  { %2006 = vmatmul.bf16.vlgmr.msrb.gmra.mxu2 %v5362_v48  ;;  %v348_v60 = vpop.f32.mrf.mxu3  ;;  %v3996_v38 = vld [vmem:[#allocation4 + $0x5b0] sm:$0xf0]  ;;  %v3871_v45 = vor.u32 %v4844_v33, %v3868_v36  ;;  %v4872_v53 = vld [vmem:[#allocation4 + $0x584] sm:$0xf]  ;;  %v3855_v59 = vor.u32 %v4840_v51, %v3852_v52  ;;  %v4759_v51 = vld [vmem:[#allocation4 + $0x1f4] sm:$0xf0] }
  0xc7   :  { %2019 = vmatmul.bf16.vlgmr.msrb.gmra.mxu3 %v5364_v54  ;;  %2054 = vmatpush.bf16.msra.mxu2 %v3583_v47  ;;  %v3999_v46 = vor.u32 %v4876_v37, %v3996_v38  ;;  %v4944_v47 = vld [vmem:[#allocation4 + $0x7c4] sm:$0xf]  ;;  %v4124_v58 = vld [vmem:[#allocation4 + $0x6b0] sm:$0xf0] }
  0xc8   :  { %2067 = vmatpush.bf16.msra.mxu3 %v3711_v49  ;;  %2030 = vmatpush.bf16.msra.mxu0 %v3295_v23  ;;  %v4268_v49 = vld [vmem:[#allocation4 + $0x7d0] sm:$0xf0]  ;;  %v4908_v57 = vld [vmem:[#allocation4 + $0x6a4] sm:$0xf] }
  0xc9   :  { %2043 = vmatpush.bf16.msra.mxu1 %v3423_v55  ;;  %v3980_v23 = vld [vmem:[#allocation4 + $0x590] sm:$0xf0]  ;;  %v4143_v55 = vor.u32 %v4912_v43, %v4140_v44  ;;  %v4271_v56 = vor.u32 %v4944_v47, %v4268_v49  ;;  %v4940_v61 = vld [vmem:[#allocation4 + $0x7a4] sm:$0xf]  ;;  %v4127_v4 = vor.u32 %v4908_v57, %v4124_v58  ;;  %v4727_v47 = vld [vmem:[#allocation4 + $0xf4] sm:$0xf0] }
  0xca   :  { %v3983_v60 = vor.u32 %v4872_v53, %v3980_v23  ;;  %v4252_v62 = vld [vmem:[#allocation4 + $0x7b0] sm:$0xf0]  ;;  %v4836_v63 = vld [vmem:[#allocation4 + $0x464] sm:$0xf]  ;;  %v3522_v49 = vld [vmem:[#allocation4 + $0x1e8] sm:$0xf] }
  0xcb   :  { %2055 = vmatpush.bf16.msra.mxu2 %v3567_v0  ;;  %v3836_v0 = vld [vmem:[#allocation4 + $0x470] sm:$0xf0]  ;;  %v4868_v1 = vld [vmem:[#allocation4 + $0x564] sm:$0xf] }
  0xcc   :  { %2068 = vmatpush.bf16.msra.mxu3 %v3695_v5  ;;  %2031 = vmatpush.bf16.msra.mxu0 %v3279_v9  ;;  %v3964_v2 = vld [vmem:[#allocation4 + $0x570] sm:$0xf0]  ;;  %v4255_v5 = vor.u32 %v4940_v61, %v4252_v62  ;;  %v4904_v6 = vld [vmem:[#allocation4 + $0x684] sm:$0xf]  ;;  %v3839_v9 = vor.u32 %v4836_v63, %v3836_v0  ;;  %v3378_v61 = vld [vmem:[#allocation4 + $0xc8] sm:$0xf] }
  0xcd   :  { %2044 = vmatpush.bf16.msra.mxu1 %v3407_v10  ;;  %v4108_v7 = vld [vmem:[#allocation4 + $0x690] sm:$0xf0]  ;;  %v3967_v10 = vor.u32 %v4868_v1, %v3964_v2  ;;  %v4936_v11 = vld [vmem:[#allocation4 + $0x784] sm:$0xf]  ;;  %v4723_v63 = vld [vmem:[#allocation4 + $0xd4] sm:$0xf0] }
  0xce   :  { %v4236_v12 = vld [vmem:[#allocation4 + $0x790] sm:$0xf0]  ;;  %v4864_v16 = vld [vmem:[#allocation4 + $0x544] sm:$0xf]  ;;  %v4111_v18 = vor.u32 %v4904_v6, %v4108_v7  ;;  %v3506_v0 = vld [vmem:[#allocation4 + $0x1c8] sm:$0xf] }
  0xcf   :  { %2056 = vmatpush.bf16.msra.mxu2 %v3551_v17  ;;  %2032 = vmatmul.bf16.vlgmr.msra.gmra.mxu0 %v5340_v3  ;;  %v3948_v17 = vld [vmem:[#allocation4 + $0x550] sm:$0xf0]  ;;  %v4239_v19 = vor.u32 %v4936_v11, %v4236_v12  ;;  %v4900_v21 = vld [vmem:[#allocation4 + $0x664] sm:$0xf]  ;;  %v4755_v1 = vld [vmem:[#allocation4 + $0x1d4] sm:$0xf0]  ;;  %v3379_v11 = vor.u32 %v4723_v63, %v3378_v61 }
  0xd0   :  { %2076 = vmatpush.bf16.msrb.mxu0 %v3903_v14  ;;  %2069 = vmatpush.bf16.msra.mxu3 %v3679_v50  ;;  %v4832_v14 = vld [vmem:[#allocation4 + $0x444] sm:$0xf]  ;;  %v4092_v50 = vld [vmem:[#allocation4 + $0x670] sm:$0xf0]  ;;  %v3951_v24 = vor.u32 %v4864_v16, %v3948_v17  ;;  %v3507_v12 = vor.u32 %v4755_v1, %v3506_v0  ;;  %v3362_v17 = vld [vmem:[#allocation4 + $0xa8] sm:$0xf] }
  0xd1   :  { %2089 = vmatpush.bf16.msrb.mxu1 %v4031_v15  ;;  %v3820_v15 = vld [vmem:[#allocation4 + $0x450] sm:$0xf0]  ;;  %v4932_v25 = vld [vmem:[#allocation4 + $0x764] sm:$0xf]  ;;  %v4095_v31 = vor.u32 %v4900_v21, %v4092_v50  ;;  %v3490_v50 = vld [vmem:[#allocation4 + $0x1a8] sm:$0xf] }
  0xd2   :  { %2045 = vmatmul.bf16.vlgmr.msra.gmra.mxu1 %v5342_v8  ;;  %v3823_v22 = vor.u32 %v4832_v14, %v3820_v15  ;;  %v4220_v26 = vld [vmem:[#allocation4 + $0x770] sm:$0xf0]  ;;  %v4828_v27 = vld [vmem:[#allocation4 + $0x424] sm:$0xf]  ;;  %v3778_v14 = vld [vmem:[#allocation4 + $0x3e8] sm:$0xf] }
  0xd3   :  { %2057 = vmatpush.bf16.msra.mxu2 %v3535_v35  ;;  %v3804_v28 = vld [vmem:[#allocation4 + $0x430] sm:$0xf0]  ;;  %v4223_v32 = vor.u32 %v4932_v25, %v4220_v26  ;;  %v4896_v33 = vld [vmem:[#allocation4 + $0x644] sm:$0xf]  ;;  %v4823_v15 = vld [vmem:[#allocation4 + $0x3f4] sm:$0xf0] }
  0xd4   :  { %2077 = vmatpush.bf16.msrb.mxu0 %v3887_v29  ;;  %2070 = vmatpush.bf16.msra.mxu3 %v3663_v39  ;;  %v4860_v29 = vld [vmem:[#allocation4 + $0x524] sm:$0xf]  ;;  %v4076_v35 = vld [vmem:[#allocation4 + $0x650] sm:$0xf0]  ;;  %v3807_v37 = vor.u32 %v4828_v27, %v3804_v28  ;;  %v3634_v25 = vld [vmem:[#allocation4 + $0x2c8] sm:$0xf] }
  0xd5   :  { %2090 = vmatpush.bf16.msrb.mxu1 %v4015_v30  ;;  %v3932_v30 = vld [vmem:[#allocation4 + $0x530] sm:$0xf0]  ;;  %v4928_v36 = vld [vmem:[#allocation4 + $0x744] sm:$0xf]  ;;  %v4787_v26 = vld [vmem:[#allocation4 + $0x2d4] sm:$0xf0] }
  0xd6   :  { %2058 = vmatmul.bf16.vlgmr.msra.gmra.mxu2 %v5348_v34  ;;  %v3935_v38 = vor.u32 %v4860_v29, %v3932_v30  ;;  %v4204_v39 = vld [vmem:[#allocation4 + $0x750] sm:$0xf0]  ;;  %v4856_v43 = vld [vmem:[#allocation4 + $0x504] sm:$0xf]  ;;  %v3762_v28 = vld [vmem:[#allocation4 + $0x3c8] sm:$0xf] }
  0xd7   :  { %2102 = vmatpush.bf16.msrb.mxu2 %v4159_v41  ;;  %2071 = vmatmul.bf16.vlgmr.msra.gmra.mxu3 %v5350_v40  ;;  %v4824_v41 = vld [vmem:[#allocation4 + $0x404] sm:$0xf]  ;;  %v3916_v44 = vld [vmem:[#allocation4 + $0x510] sm:$0xf0]  ;;  %v4207_v52 = vor.u32 %v4928_v36, %v4204_v39  ;;  %v4819_v29 = vld [vmem:[#allocation4 + $0x3d4] sm:$0xf0] }
  0xd8   :  { %2115 = vmatpush.bf16.msrb.mxu3 %v4287_v42  ;;  %2078 = vmatpush.bf16.msrb.mxu0 %v3871_v45  ;;  %v3788_v42 = vld [vmem:[#allocation4 + $0x410] sm:$0xf0]  ;;  %v3394_v45 = vld [vmem:[#allocation4 + $0xe8] sm:$0xf]  ;;  %v4892_v53 = vld [vmem:[#allocation4 + $0x624] sm:$0xf] }
  0xd9   :  { %2091 = vmatpush.bf16.msrb.mxu1 %v3999_v46  ;;  %v4079_v46 = vor.u32 %v4896_v33, %v4076_v35  ;;  %v4060_v23 = vld [vmem:[#allocation4 + $0x630] sm:$0xf0]  ;;  %v4924_v57 = vld [vmem:[#allocation4 + $0x724] sm:$0xf]  ;;  %v3635_v33 = vor.u32 %v4787_v26, %v3634_v25  ;;  %v3474_v35 = vld [vmem:[#allocation4 + $0x188] sm:$0xf] }
  0xda   :  { %v4188_v58 = vld [vmem:[#allocation4 + $0x730] sm:$0xf0]  ;;  %v4063_v62 = vor.u32 %v4892_v53, %v4060_v23  ;;  %v4920_v6 = vld [vmem:[#allocation4 + $0x704] sm:$0xf]  ;;  %v4747_v36 = vld [vmem:[#allocation4 + $0x194] sm:$0xf0] }
  0xdb   :  { %2103 = vmatpush.bf16.msrb.mxu2 %v4143_v55  ;;  %v3791_v55 = vor.u32 %v4824_v41, %v3788_v42  ;;  %v4191_v2 = vor.u32 %v4924_v57, %v4188_v58  ;;  %v4172_v7 = vld [vmem:[#allocation4 + $0x710] sm:$0xf0]  ;;  %v4783_v39 = vld [vmem:[#allocation4 + $0x2b4] sm:$0xf0]  ;;  %v3746_v42 = vld [vmem:[#allocation4 + $0x3a8] sm:$0xf] }
  0xdc   :  { %2116 = vmatpush.bf16.msrb.mxu3 %v4271_v56  ;;  %2079 = vmatpush.bf16.msrb.mxu0 %v3855_v59  ;;  %v3919_v56 = vor.u32 %v4856_v43, %v3916_v44  ;;  %v3395_v59 = vor.u32 %v4727_v47, %v3394_v45  ;;  %v4815_v43 = vld [vmem:[#allocation4 + $0x3b4] sm:$0xf0]  ;;  %v3475_v44 = vor.u32 %v4747_v36, %v3474_v35  ;;  %v3330_v45 = vld [vmem:[#allocation4 + $0x68] sm:$0xf] }
  0xdd   :  { %2092 = vmatpush.bf16.msrb.mxu1 %v3983_v60  ;;  %v3523_v60 = vor.u32 %v4759_v51, %v3522_v49  ;;  %v3458_v49 = vld [vmem:[#allocation4 + $0x168] sm:$0xf]  ;;  %v4743_v51 = vld [vmem:[#allocation4 + $0x174] sm:$0xf0] }
  0xde   :  { %v3602_v53 = vld [vmem:[#allocation4 + $0x288] sm:$0xf]  ;;  %v4779_v23 = vld [vmem:[#allocation4 + $0x294] sm:$0xf0]  ;;  %v3459_v58 = vor.u32 %v4743_v51, %v3458_v49 }
  0xdf   :  { %2104 = vmatpush.bf16.msrb.mxu2 %v4127_v4  ;;  %v4888_v4 = vld [vmem:[#allocation4 + $0x604] sm:$0xf]  ;;  %v4811_v57 = vld [vmem:[#allocation4 + $0x394] sm:$0xf0]  ;;  %v3603_v61 = vor.u32 %v4779_v23, %v3602_v53  ;;  %v3586_v1 = vld [vmem:[#allocation4 + $0x268] sm:$0xf] }
  0xe0   :  { %2117 = vmatpush.bf16.msrb.mxu3 %v4255_v5  ;;  %2080 = vmatpush.bf16.msrb.mxu0 %v3839_v9  ;;  %v4044_v5 = vld [vmem:[#allocation4 + $0x610] sm:$0xf0]  ;;  %v3650_v9 = vld [vmem:[#allocation4 + $0x2e8] sm:$0xf]  ;;  %v4739_v63 = vld [vmem:[#allocation4 + $0x154] sm:$0xf0] }
  0xe1   :  { %2093 = vmatpush.bf16.msrb.mxu1 %v3967_v10  ;;  %v4791_v10 = vld [vmem:[#allocation4 + $0x2f4] sm:$0xf0]  ;;  %v4047_v16 = vor.u32 %v4888_v4, %v4044_v5  ;;  %v3714_v5 = vld [vmem:[#allocation4 + $0x368] sm:$0xf] }
  0xe2   :  { %v3651_v21 = vor.u32 %v4791_v10, %v3650_v9  ;;  %v3298_v9 = vld [vmem:[#allocation4 + $0x28] sm:$0xf]  ;;  %v4703_v10 = vld [vmem:[#allocation4 + $0x34] sm:$0xf0] }
  0xe3   :  { %2105 = vmatpush.bf16.msrb.mxu2 %v4111_v18  ;;  %v4719_v18 = vld [vmem:[#allocation4 + $0xb4] sm:$0xf0]  ;;  %v3410_v25 = vld [vmem:[#allocation4 + $0x108] sm:$0xf] }
  0xe4   :  { %2118 = vmatpush.bf16.msrb.mxu3 %v4239_v19  ;;  %2081 = vmatpush.bf16.msrb.mxu0 %v3823_v22  ;;  %v4175_v19 = vor.u32 %v4920_v6, %v4172_v7  ;;  %v4751_v22 = vld [vmem:[#allocation4 + $0x1b4] sm:$0xf0]  ;;  %v3363_v27 = vor.u32 %v4719_v18, %v3362_v17  ;;  %v3299_v18 = vor.u32 %v4703_v10, %v3298_v9  ;;  %v3538_v51 = vld [vmem:[#allocation4 + $0x208] sm:$0xf] }
  0xe5   :  { %2094 = vmatpush.bf16.msrb.mxu1 %v3951_v24  ;;  %v3779_v24 = vor.u32 %v4823_v15, %v3778_v14  ;;  %v3491_v30 = vor.u32 %v4751_v22, %v3490_v50  ;;  %v4807_v6 = vld [vmem:[#allocation4 + $0x374] sm:$0xf0]  ;;  %v3282_v50 = vld [vmem:[#allocation4 + $0x8] sm:$0xf] }
  0xe6   :  { %v4735_v14 = vld [vmem:[#allocation4 + $0x134] sm:$0xf0]  ;;  %v3715_v15 = vor.u32 %v4807_v6, %v3714_v5  ;;  %v3666_v53 = vld [vmem:[#allocation4 + $0x308] sm:$0xf] }
  0xe7   :  { %2106 = vmatpush.bf16.msrb.mxu2 %v4095_v31  ;;  %v3346_v31 = vld [vmem:[#allocation4 + $0x88] sm:$0xf]  ;;  %v4771_v17 = vld [vmem:[#allocation4 + $0x254] sm:$0xf0] }
  0xe8   :  { %2119 = vmatpush.bf16.msrb.mxu3 %v4223_v32  ;;  %2082 = vmatpush.bf16.msrb.mxu0 %v3807_v37  ;;  %v4715_v32 = vld [vmem:[#allocation4 + $0x94] sm:$0xf0]  ;;  %v3763_v37 = vor.u32 %v4819_v29, %v3762_v28  ;;  %v3906_v28 = vld [vmem:[#allocation4 + $0x4e8] sm:$0xf] }
  0xe9   :  { %2095 = vmatpush.bf16.msrb.mxu1 %v3935_v38  ;;  %v3618_v38 = vld [vmem:[#allocation4 + $0x2a8] sm:$0xf]  ;;  %v3347_v41 = vor.u32 %v4715_v32, %v3346_v31  ;;  %v4731_v26 = vld [vmem:[#allocation4 + $0x114] sm:$0xf0] }
  0xea   :  { %v3619_v47 = vor.u32 %v4783_v39, %v3618_v38  ;;  %v4855_v29 = vld [vmem:[#allocation4 + $0x4f4] sm:$0xf0]  ;;  %v3411_v39 = vor.u32 %v4731_v26, %v3410_v25  ;;  %v4146_v6 = vld [vmem:[#allocation4 + $0x6c8] sm:$0xf] }
  0xeb   :  { %2107 = vmatpush.bf16.msrb.mxu2 %v4079_v46  ;;  %v4711_v46 = vld [vmem:[#allocation4 + $0x74] sm:$0xf0]  ;;  %v4274_v10 = vld [vmem:[#allocation4 + $0x7c8] sm:$0xf] }
  0xec   :  { %2120 = vmatpush.bf16.msrb.mxu3 %v4207_v52  ;;  %2083 = vmatpush.bf16.msrb.mxu0 %v3791_v55  ;;  %v3747_v52 = vor.u32 %v4815_v43, %v3746_v42  ;;  %v3331_v55 = vor.u32 %v4711_v46, %v3330_v45  ;;  %v4887_v32 = vld [vmem:[#allocation4 + $0x5f4] sm:$0xf0]  ;;  %v3890_v42 = vld [vmem:[#allocation4 + $0x4c8] sm:$0xf] }
  0xed   :  { %2096 = vmatpush.bf16.msrb.mxu1 %v3919_v56  ;;  %v3730_v56 = vld [vmem:[#allocation4 + $0x388] sm:$0xf]  ;;  %v4767_v35 = vld [vmem:[#allocation4 + $0x234] sm:$0xf0] }
  0xee   :  { %v3731_v0 = vor.u32 %v4811_v57, %v3730_v56  ;;  %v4799_v38 = vld [vmem:[#allocation4 + $0x334] sm:$0xf0]  ;;  %v4018_v46 = vld [vmem:[#allocation4 + $0x5c8] sm:$0xf] }
  0xef   :  { %2108 = vmatpush.bf16.msrb.mxu2 %v4063_v62  ;;  %2084 = vmatmul.bf16.vlgmr.msrb.gmra.mxu0 %v5356_v13  ;;  %v3442_v62 = vld [vmem:[#allocation4 + $0x148] sm:$0xf]  ;;  %v4851_v45 = vld [vmem:[#allocation4 + $0x4d4] sm:$0xf0] }
  0xf0   :  { %2128 = vmatpush.bf16.msra.mxu0 %v3395_v59  ;;  %2121 = vmatpush.bf16.msrb.mxu3 %v4191_v2  ;;  %v3314_v59 = vld [vmem:[#allocation4 + $0x48] sm:$0xf]  ;;  %v4775_v2 = vld [vmem:[#allocation4 + $0x274] sm:$0xf0]  ;;  %v3443_v7 = vor.u32 %v4739_v63, %v3442_v62  ;;  %v3891_v57 = vor.u32 %v4851_v45, %v3890_v42 }
  0xf1   :  { %2141 = vmatpush.bf16.msra.mxu1 %v3523_v60  ;;  %v4707_v60 = vld [vmem:[#allocation4 + $0x54] sm:$0xf0]  ;;  %v3874_v62 = vld [vmem:[#allocation4 + $0x4a8] sm:$0xf] }
  0xf2   :  { %2097 = vmatmul.bf16.vlgmr.msrb.gmra.mxu1 %v5358_v20  ;;  %v3315_v4 = vor.u32 %v4707_v60, %v3314_v59  ;;  %v4795_v23 = vld [vmem:[#allocation4 + $0x314] sm:$0xf0] }
  0xf3   :  { %2109 = vmatpush.bf16.msrb.mxu2 %v4047_v16  ;;  %v3570_v16 = vld [vmem:[#allocation4 + $0x248] sm:$0xf]  ;;  %v4919_v56 = vld [vmem:[#allocation4 + $0x6f4] sm:$0xf0] }
  0xf4   :  { %2129 = vmatpush.bf16.msra.mxu0 %v3379_v11  ;;  %2122 = vmatpush.bf16.msrb.mxu3 %v4175_v19  ;;  %v3587_v11 = vor.u32 %v4775_v2, %v3586_v1  ;;  %v3698_v19 = vld [vmem:[#allocation4 + $0x348] sm:$0xf]  ;;  %v4951_v59 = vld [vmem:[#allocation4 + $0x7f4] sm:$0xf0] }
  0xf5   :  { %2142 = vmatpush.bf16.msra.mxu1 %v3507_v12  ;;  %v3426_v12 = vld [vmem:[#allocation4 + $0x128] sm:$0xf]  ;;  %v4847_v63 = vld [vmem:[#allocation4 + $0x4b4] sm:$0xf0] }
  0xf6   :  { %2110 = vmatmul.bf16.vlgmr.msrb.gmra.mxu2 %v5362_v48  ;;  %v3427_v22 = vor.u32 %v4735_v14, %v3426_v12  ;;  %v4002_v2 = vld [vmem:[#allocation4 + $0x5a8] sm:$0xf]  ;;  %v3875_v9 = vor.u32 %v4847_v63, %v3874_v62  ;;  %v4943_v25 = vld [vmem:[#allocation4 + $0x7b4] sm:$0xf0] }
  0xf7   :  { %2154 = vmatpush.bf16.msra.mxu2 %v3651_v21  ;;  %2123 = vmatmul.bf16.vlgmr.msrb.gmra.mxu3 %v5364_v54  ;;  %v4803_v21 = vld [vmem:[#allocation4 + $0x354] sm:$0xf0]  ;;  %v3858_v14 = vld [vmem:[#allocation4 + $0x488] sm:$0xf] }
  0xf8   :  { %2167 = vmatpush.bf16.msra.mxu3 %v3779_v24  ;;  %2130 = vmatpush.bf16.msra.mxu0 %v3363_v27  ;;  %v4699_v24 = vld [vmem:[#allocation4 + $0x14] sm:$0xf0]  ;;  %v3571_v27 = vor.u32 %v4771_v17, %v3570_v16  ;;  %v3699_v31 = vor.u32 %v4803_v21, %v3698_v19  ;;  %v3986_v17 = vld [vmem:[#allocation4 + $0x588] sm:$0xf] }
  0xf9   :  { %2143 = vmatpush.bf16.msra.mxu1 %v3491_v30  ;;  %v4034_v30 = vld [vmem:[#allocation4 + $0x5e8] sm:$0xf]  ;;  %v3283_v36 = vor.u32 %v4699_v24, %v3282_v50  ;;  %v4911_v50 = vld [vmem:[#allocation4 + $0x6b4] sm:$0xf0] }
  0xfa   :  { %v4035_v43 = vor.u32 %v4887_v32, %v4034_v30  ;;  %v4130_v21 = vld [vmem:[#allocation4 + $0x6a8] sm:$0xf]  ;;  %v4835_v42 = vld [vmem:[#allocation4 + $0x454] sm:$0xf0] }
  0xfb   :  { %2155 = vmatpush.bf16.msra.mxu2 %v3635_v33  ;;  %v3554_v33 = vld [vmem:[#allocation4 + $0x228] sm:$0xf]  ;;  %v4867_v45 = vld [vmem:[#allocation4 + $0x554] sm:$0xf0] }
  0xfc   :  { %2168 = vmatpush.bf16.msra.mxu3 %v3763_v37  ;;  %2131 = vmatpush.bf16.msra.mxu0 %v3347_v41  ;;  %v3682_v37 = vld [vmem:[#allocation4 + $0x328] sm:$0xf]  ;;  %v3907_v41 = vor.u32 %v4855_v29, %v3906_v28  ;;  %v4839_v28 = vld [vmem:[#allocation4 + $0x474] sm:$0xf0]  ;;  %v4131_v29 = vor.u32 %v4911_v50, %v4130_v21 }
  0xfd   :  { %2144 = vmatpush.bf16.msra.mxu1 %v3475_v44  ;;  %v3555_v44 = vor.u32 %v4767_v35, %v3554_v33  ;;  %v3683_v49 = vor.u32 %v4799_v38, %v3682_v37  ;;  %v4258_v24 = vld [vmem:[#allocation4 + $0x7a8] sm:$0xf]  ;;  %v4907_v35 = vld [vmem:[#allocation4 + $0x694] sm:$0xf0] }
  0xfe   :  { %v3970_v30 = vld [vmem:[#allocation4 + $0x568] sm:$0xf]  ;;  %v4259_v32 = vor.u32 %v4943_v25, %v4258_v24  ;;  %v4939_v38 = vld [vmem:[#allocation4 + $0x794] sm:$0xf0]  ;;  %v4721_v24 = vld [vmem:[#allocation4 + $0xcc] sm:$0xf] }
  0xff   :  { %2156 = vmatpush.bf16.msra.mxu2 %v3619_v47  ;;  %v4883_v47 = vld [vmem:[#allocation4 + $0x5d4] sm:$0xf0]  ;;  %v4114_v33 = vld [vmem:[#allocation4 + $0x688] sm:$0xf] }
 0x100   :  { %2169 = vmatpush.bf16.msra.mxu3 %v3747_v52  ;;  %2132 = vmatpush.bf16.msra.mxu0 %v3331_v55  ;;  %v4763_v52 = vld [vmem:[#allocation4 + $0x214] sm:$0xf0]  ;;  %v4162_v55 = vld [vmem:[#allocation4 + $0x6e8] sm:$0xf]  ;;  %v4019_v60 = vor.u32 %v4883_v47, %v4018_v46 }
 0x101   :  { %2145 = vmatpush.bf16.msra.mxu1 %v3459_v58  ;;  %v4290_v58 = vld [vmem:[#allocation4 + $0x7e8] sm:$0xf]  ;;  %v4163_v1 = vor.u32 %v4919_v56, %v4162_v55  ;;  %v4831_v56 = vld [vmem:[#allocation4 + $0x434] sm:$0xf0] }
 0x102   :  { %v4291_v5 = vor.u32 %v4951_v59, %v4290_v58  ;;  %v4242_v37 = vld [vmem:[#allocation4 + $0x788] sm:$0xf]  ;;  %v4863_v59 = vld [vmem:[#allocation4 + $0x534] sm:$0xf0] }
 0x103   :  { %2157 = vmatpush.bf16.msra.mxu2 %v3603_v61  ;;  %v3539_v61 = vor.u32 %v4763_v52, %v3538_v51  ;;  %v4243_v46 = vor.u32 %v4939_v38, %v4242_v37  ;;  %v4098_v47 = vld [vmem:[#allocation4 + $0x668] sm:$0xf]  ;;  %v4899_v62 = vld [vmem:[#allocation4 + $0x654] sm:$0xf0]  ;;  %v3652_v37 = vld [vmem:[#allocation4 + $0x2f8] sm:$0xf0] }
 0x104   :  { %2170 = vmatpush.bf16.msra.mxu3 %v3731_v0  ;;  %2133 = vmatpush.bf16.msra.mxu0 %v3315_v4  ;;  %v3667_v0 = vor.u32 %v4795_v23, %v3666_v53  ;;  %v4879_v4 = vld [vmem:[#allocation4 + $0x5b4] sm:$0xf0]  ;;  %v4226_v52 = vld [vmem:[#allocation4 + $0x768] sm:$0xf] }
 0x105   :  { %2146 = vmatpush.bf16.msra.mxu1 %v3443_v7  ;;  %v4915_v7 = vld [vmem:[#allocation4 + $0x6d4] sm:$0xf0]  ;;  %v4003_v12 = vor.u32 %v4879_v4, %v4002_v2  ;;  %v3810_v55 = vld [vmem:[#allocation4 + $0x428] sm:$0xf] }
 0x106   :  { %v4147_v16 = vor.u32 %v4915_v7, %v4146_v6  ;;  %v4935_v53 = vld [vmem:[#allocation4 + $0x774] sm:$0xf0]  ;;  %v3938_v58 = vld [vmem:[#allocation4 + $0x528] sm:$0xf]  ;;  %v3811_v63 = vor.u32 %v4831_v56, %v3810_v55  ;;  %v4817_v56 = vld [vmem:[#allocation4 + $0x3cc] sm:$0xf] }
 0x107   :  { %2158 = vmatpush.bf16.msra.mxu2 %v3587_v11  ;;  %v4947_v11 = vld [vmem:[#allocation4 + $0x7d4] sm:$0xf0]  ;;  %v3794_v2 = vld [vmem:[#allocation4 + $0x408] sm:$0xf]  ;;  %v3939_v4 = vor.u32 %v4863_v59, %v3938_v58  ;;  %v4713_v59 = vld [vmem:[#allocation4 + $0x8c] sm:$0xf] }
 0x108   :  { %2171 = vmatpush.bf16.msra.mxu3 %v3715_v15  ;;  %2134 = vmatpush.bf16.msra.mxu0 %v3299_v18  ;;  %v4843_v15 = vld [vmem:[#allocation4 + $0x494] sm:$0xf0]  ;;  %v4275_v19 = vor.u32 %v4947_v11, %v4274_v10  ;;  %v3922_v6 = vld [vmem:[#allocation4 + $0x508] sm:$0xf]  ;;  %v4725_v10 = vld [vmem:[#allocation4 + $0xec] sm:$0xf] }
 0x109   :  { %2147 = vmatpush.bf16.msra.mxu1 %v3427_v22  ;;  %v4875_v18 = vld [vmem:[#allocation4 + $0x594] sm:$0xf0]  ;;  %v3859_v22 = vor.u32 %v4843_v15, %v3858_v14  ;;  %v3396_v11 = vld [vmem:[#allocation4 + $0xf8] sm:$0xf0] }
 0x10a   :  { %v3987_v26 = vor.u32 %v4875_v18, %v3986_v17  ;;  %v4859_v7 = vld [vmem:[#allocation4 + $0x514] sm:$0xf0]  ;;  %v3524_v15 = vld [vmem:[#allocation4 + $0x1f8] sm:$0xf0] }
 0x10b   :  { %2159 = vmatpush.bf16.msra.mxu2 %v3571_v27  ;;  %v3842_v27 = vld [vmem:[#allocation4 + $0x468] sm:$0xf]  ;;  %v4895_v17 = vld [vmem:[#allocation4 + $0x634] sm:$0xf0]  ;;  %v3923_v50 = vor.u32 %v4859_v7, %v3922_v6  ;;  %v4813_v7 = vld [vmem:[#allocation4 + $0x3ac] sm:$0xf] }
 0x10c   :  { %2172 = vmatpush.bf16.msra.mxu3 %v3699_v31  ;;  %2135 = vmatpush.bf16.msra.mxu0 %v3283_v36  ;;  %v4871_v31 = vld [vmem:[#allocation4 + $0x574] sm:$0xf0]  ;;  %v3843_v36 = vor.u32 %v4839_v28, %v3842_v27  ;;  %v3380_v27 = vld [vmem:[#allocation4 + $0xd8] sm:$0xf0]  ;;  %v4753_v28 = vld [vmem:[#allocation4 + $0x1cc] sm:$0xf] }
 0x10d   :  { %2148 = vmatpush.bf16.msra.mxu1 %v3411_v39  ;;  %v3971_v39 = vor.u32 %v4871_v31, %v3970_v30  ;;  %v4927_v21 = vld [vmem:[#allocation4 + $0x734] sm:$0xf0]  ;;  %v4050_v31 = vld [vmem:[#allocation4 + $0x608] sm:$0xf]  ;;  %v3383_v38 = vor.u32 %v4721_v24, %v3380_v27 }
 0x10f   :  { %2160 = vmatpush.bf16.msra.mxu2 %v3555_v44  ;;  %2136 = vmatmul.bf16.vlgmr.msra.gmra.mxu0 %v5340_v3  ;;  %v3954_v44 = vld [vmem:[#allocation4 + $0x548] sm:$0xf] }
 0x110   :  { %2180 = vmatpush.bf16.msrb.mxu0 %v3907_v41  ;;  %2173 = vmatpush.bf16.msra.mxu3 %v3683_v49  ;;  %v3826_v41 = vld [vmem:[#allocation4 + $0x448] sm:$0xf]  ;;  %v4903_v49 = vld [vmem:[#allocation4 + $0x674] sm:$0xf0]  ;;  %v3955_v23 = vor.u32 %v4867_v45, %v3954_v44  ;;  %v4717_v44 = vld [vmem:[#allocation4 + $0xac] sm:$0xf] }
 0x111   :  { %2193 = vmatpush.bf16.msrb.mxu1 %v4035_v43  ;;  %v4115_v43 = vor.u32 %v4907_v35, %v4114_v33  ;;  %v3827_v51 = vor.u32 %v4835_v42, %v3826_v41  ;;  %v4178_v33 = vld [vmem:[#allocation4 + $0x708] sm:$0xf]  ;;  %v4923_v35 = vld [vmem:[#allocation4 + $0x714] sm:$0xf0]  ;;  %v3780_v41 = vld [vmem:[#allocation4 + $0x3f8] sm:$0xf0] }
 0x112   :  { %2149 = vmatmul.bf16.vlgmr.msra.gmra.mxu1 %v5342_v8  ;;  %v3364_v45 = vld [vmem:[#allocation4 + $0xb8] sm:$0xf0] }
 0x113   :  { %2161 = vmatpush.bf16.msra.mxu2 %v3539_v61  ;;  %v4082_v61 = vld [vmem:[#allocation4 + $0x648] sm:$0xf]  ;;  %v3367_v55 = vor.u32 %v4717_v44, %v3364_v45  ;;  %v4733_v44 = vld [vmem:[#allocation4 + $0x12c] sm:$0xf]  ;;  %v3428_v45 = vld [vmem:[#allocation4 + $0x138] sm:$0xf0] }
 0x114   :  { %2181 = vmatpush.bf16.msrb.mxu0 %v3891_v57  ;;  %2174 = vmatpush.bf16.msra.mxu3 %v3667_v0  ;;  %v4099_v57 = vor.u32 %v4903_v49, %v4098_v47  ;;  %v4210_v0 = vld [vmem:[#allocation4 + $0x748] sm:$0xf]  ;;  %v4749_v49 = vld [vmem:[#allocation4 + $0x1ac] sm:$0xf] }
 0x115   :  { %2194 = vmatpush.bf16.msrb.mxu1 %v4019_v60  ;;  %v4227_v60 = vor.u32 %v4935_v53, %v4226_v52  ;;  %v4785_v53 = vld [vmem:[#allocation4 + $0x2cc] sm:$0xf] }
 0x116   :  { %2162 = vmatmul.bf16.vlgmr.msra.gmra.mxu2 %v5348_v34 }
 0x117   :  { %2206 = vmatpush.bf16.msrb.mxu2 %v4163_v1  ;;  %2175 = vmatmul.bf16.vlgmr.msra.gmra.mxu3 %v5350_v40  ;;  %v4931_v1 = vld [vmem:[#allocation4 + $0x754] sm:$0xf0] }
 0x118   :  { %2219 = vmatpush.bf16.msrb.mxu3 %v4291_v5  ;;  %2182 = vmatpush.bf16.msrb.mxu0 %v3875_v9  ;;  %v4827_v5 = vld [vmem:[#allocation4 + $0x414] sm:$0xf0]  ;;  %v4083_v9 = vor.u32 %v4899_v62, %v4082_v61  ;;  %v4211_v14 = vor.u32 %v4931_v1, %v4210_v0  ;;  %v4745_v62 = vld [vmem:[#allocation4 + $0x18c] sm:$0xf] }
 0x119   :  { %2195 = vmatpush.bf16.msrb.mxu1 %v4003_v12  ;;  %v4757_v12 = vld [vmem:[#allocation4 + $0x1ec] sm:$0xf]  ;;  %v3795_v18 = vor.u32 %v4827_v5, %v3794_v2 }
 0x11a   :  { %v3527_v25 = vor.u32 %v4757_v12, %v3524_v15  ;;  %v4781_v2 = vld [vmem:[#allocation4 + $0x2ac] sm:$0xf]  ;;  %v3332_v12 = vld [vmem:[#allocation4 + $0x78] sm:$0xf0] }
 0x11b   :  { %2207 = vmatpush.bf16.msrb.mxu2 %v4147_v16  ;;  %v4066_v16 = vld [vmem:[#allocation4 + $0x628] sm:$0xf]  ;;  %v4741_v15 = vld [vmem:[#allocation4 + $0x16c] sm:$0xf] }
 0x11c   :  { %2220 = vmatpush.bf16.msrb.mxu3 %v4275_v19  ;;  %2183 = vmatpush.bf16.msrb.mxu0 %v3859_v22  ;;  %v4194_v19 = vld [vmem:[#allocation4 + $0x728] sm:$0xf]  ;;  %v3399_v22 = vor.u32 %v4725_v10, %v3396_v11  ;;  %v4709_v11 = vld [vmem:[#allocation4 + $0x6c] sm:$0xf] }
 0x11d   :  { %2196 = vmatpush.bf16.msrb.mxu1 %v3987_v26  ;;  %v4067_v26 = vor.u32 %v4895_v17, %v4066_v16  ;;  %v4195_v30 = vor.u32 %v4927_v21, %v4194_v19  ;;  %v3460_v16 = vld [vmem:[#allocation4 + $0x178] sm:$0xf0]  ;;  %v3335_v21 = vor.u32 %v4709_v11, %v3332_v12  ;;  %v4797_v12 = vld [vmem:[#allocation4 + $0x32c] sm:$0xf] }
 0x11e   :  { %v3604_v19 = vld [vmem:[#allocation4 + $0x298] sm:$0xf0]  ;;  %v3463_v24 = vor.u32 %v4741_v15, %v3460_v16 }
 0x11f   :  { %2208 = vmatpush.bf16.msrb.mxu2 %v4131_v29  ;;  %v3508_v29 = vld [vmem:[#allocation4 + $0x1d8] sm:$0xf0] }
 0x120   :  { %2221 = vmatpush.bf16.msrb.mxu3 %v4259_v32  ;;  %2184 = vmatpush.bf16.msrb.mxu0 %v3843_v36  ;;  %v4891_v32 = vld [vmem:[#allocation4 + $0x614] sm:$0xf0]  ;;  %v4789_v36 = vld [vmem:[#allocation4 + $0x2ec] sm:$0xf]  ;;  %v3511_v42 = vor.u32 %v4753_v28, %v3508_v29  ;;  %v3444_v29 = vld [vmem:[#allocation4 + $0x158] sm:$0xf0] }
 0x121   :  { %2197 = vmatpush.bf16.msrb.mxu1 %v3971_v39  ;;  %v4821_v39 = vld [vmem:[#allocation4 + $0x3ec] sm:$0xf]  ;;  %v3655_v47 = vor.u32 %v4789_v36, %v3652_v37 }
 0x122   :  { %v3783_v52 = vor.u32 %v4821_v39, %v3780_v41  ;;  %v4737_v28 = vld [vmem:[#allocation4 + $0x14c] sm:$0xf] }
 0x123   :  { %2209 = vmatpush.bf16.msrb.mxu2 %v4115_v43  ;;  %v4051_v43 = vor.u32 %v4891_v32, %v4050_v31  ;;  %v4773_v32 = vld [vmem:[#allocation4 + $0x26c] sm:$0xf]  ;;  %v3447_v39 = vor.u32 %v4737_v28, %v3444_v29  ;;  %v3668_v29 = vld [vmem:[#allocation4 + $0x318] sm:$0xf0] }
 0x124   :  { %2222 = vmatpush.bf16.msrb.mxu3 %v4243_v46  ;;  %2185 = vmatpush.bf16.msrb.mxu0 %v3827_v51  ;;  %v4179_v46 = vor.u32 %v4923_v35, %v4178_v33  ;;  %v3492_v51 = vld [vmem:[#allocation4 + $0x1b8] sm:$0xf0]  ;;  %v4805_v37 = vld [vmem:[#allocation4 + $0x36c] sm:$0xf] }
 0x125   :  { %2198 = vmatpush.bf16.msrb.mxu1 %v3955_v23  ;;  %v3636_v23 = vld [vmem:[#allocation4 + $0x2d8] sm:$0xf0]  ;;  %v3495_v58 = vor.u32 %v4749_v49, %v3492_v51  ;;  %v4701_v41 = vld [vmem:[#allocation4 + $0x2c] sm:$0xf] }
 0x126   :  { %v3639_v61 = vor.u32 %v4785_v53, %v3636_v23  ;;  %v3588_v33 = vld [vmem:[#allocation4 + $0x278] sm:$0xf0]  ;;  %v4801_v53 = vld [vmem:[#allocation4 + $0x34c] sm:$0xf] }
 0x127   :  { %2210 = vmatpush.bf16.msrb.mxu2 %v4099_v57  ;;  %v3764_v57 = vld [vmem:[#allocation4 + $0x3d8] sm:$0xf0] }
 0x128   :  { %2223 = vmatpush.bf16.msrb.mxu3 %v4227_v60  ;;  %2186 = vmatpush.bf16.msrb.mxu0 %v3811_v63  ;;  %v3348_v60 = vld [vmem:[#allocation4 + $0x98] sm:$0xf0]  ;;  %v3767_v1 = vor.u32 %v4817_v56, %v3764_v57  ;;  %v3431_v57 = vor.u32 %v4733_v44, %v3428_v45  ;;  %v4877_v45 = vld [vmem:[#allocation4 + $0x5ac] sm:$0xf] }
 0x129   :  { %2199 = vmatpush.bf16.msrb.mxu1 %v3939_v4  ;;  %v3476_v63 = vld [vmem:[#allocation4 + $0x198] sm:$0xf0]  ;;  %v3351_v6 = vor.u32 %v4713_v59, %v3348_v60  ;;  %v4729_v59 = vld [vmem:[#allocation4 + $0x10c] sm:$0xf] }
 0x12a   :  { %v3620_v4 = vld [vmem:[#allocation4 + $0x2b8] sm:$0xf0]  ;;  %v3479_v10 = vor.u32 %v4745_v62, %v3476_v63  ;;  %v4853_v62 = vld [vmem:[#allocation4 + $0x4ec] sm:$0xf] }
 0x12b   :  { %2211 = vmatpush.bf16.msrb.mxu2 %v4083_v9  ;;  %v5382_v0 = vpop.f32.mrf.mxu0  ;;  %v3748_v9 = vld [vmem:[#allocation4 + $0x3b8] sm:$0xf0] }
 0x12c   :  { %2224 = vmatpush.bf16.msrb.mxu3 %v4211_v14  ;;  %2187 = vmatpush.bf16.msrb.mxu0 %v3795_v18  ;;  %v5385_v5 = vpop.f32.mrf.mxu1  ;;  %v3623_v14 = vor.u32 %v4781_v2, %v3620_v4  ;;  %v3751_v17 = vor.u32 %v4813_v7, %v3748_v9  ;;  %v4777_v18 = vld [vmem:[#allocation4 + $0x28c] sm:$0xf]  ;;  %v3572_v49 = vld [vmem:[#allocation4 + $0x258] sm:$0xf0] }
 0x12d   :  { %2200 = vmatpush.bf16.msrb.mxu1 %v3923_v50  ;;  %v4809_v50 = vld [vmem:[#allocation4 + $0x38c] sm:$0xf]  ;;  %v3607_v27 = vor.u32 %v4777_v18, %v3604_v19  ;;  %v3700_v23 = vld [vmem:[#allocation4 + $0x358] sm:$0xf0] }
 0x12e   :  { %v3412_v60 = vld [vmem:[#allocation4 + $0x118] sm:$0xf0]  ;;  %v3703_v4 = vor.u32 %v4801_v53, %v3700_v23  ;;  %v4765_v7 = vld [vmem:[#allocation4 + $0x22c] sm:$0xf] }
 0x12f   :  { %2212 = vmatpush.bf16.msrb.mxu2 %v4067_v26  ;;  %2188 = vmatmul.bf16.vlgmr.msrb.gmra.mxu0 %v5356_v13  ;;  %v3316_v26 = vld [vmem:[#allocation4 + $0x58] sm:$0xf0]  ;;  %v3415_v15 = vor.u32 %v4729_v59, %v3412_v60  ;;  %v4841_v59 = vld [vmem:[#allocation4 + $0x48c] sm:$0xf] }
 0x130   :  { %2232 = vmatpush.bf16.msra.mxu0 %v3399_v22  ;;  %2225 = vmatpush.bf16.msrb.mxu3 %v4195_v30  ;;  %v3732_v22 = vld [vmem:[#allocation4 + $0x398] sm:$0xf0] }
 0x131   :  { %2245 = vmatpush.bf16.msra.mxu1 %v3527_v25  ;;  %v4705_v25 = vld [vmem:[#allocation4 + $0x4c] sm:$0xf]  ;;  %v3735_v31 = vor.u32 %v4809_v50, %v3732_v22  ;;  %v3908_v63 = vld [vmem:[#allocation4 + $0x4f8] sm:$0xf0] }
 0x132   :  { %2201 = vmatmul.bf16.vlgmr.msrb.gmra.mxu1 %v5358_v20  ;;  %v3319_v36 = vor.u32 %v4705_v25, %v3316_v26  ;;  %v3556_v9 = vld [vmem:[#allocation4 + $0x238] sm:$0xf0]  ;;  %v3911_v16 = vor.u32 %v4853_v62, %v3908_v63  ;;  %v4881_v50 = vld [vmem:[#allocation4 + $0x5cc] sm:$0xf] }
 0x133   :  { %2213 = vmatpush.bf16.msrb.mxu2 %v4051_v43  ;;  %v1931_v30 = vpop.f32.mrf.mxu0  ;;  %v3591_v43 = vor.u32 %v4773_v32, %v3588_v33  ;;  %v3559_v19 = vor.u32 %v4765_v7, %v3556_v9  ;;  %v4020_v22 = vld [vmem:[#allocation4 + $0x5d8] sm:$0xf0]  ;;  %v4761_v25 = vld [vmem:[#allocation4 + $0x20c] sm:$0xf] }
 0x134   :  { %2233 = vmatpush.bf16.msra.mxu0 %v3383_v38  ;;  %2226 = vmatpush.bf16.msrb.mxu3 %v4179_v46  ;;  %v1944_v35 = vpop.f32.mrf.mxu1  ;;  %v3716_v38 = vld [vmem:[#allocation4 + $0x378] sm:$0xf0]  ;;  %v4917_v30 = vld [vmem:[#allocation4 + $0x6ec] sm:$0xf] }
 0x135   :  { %2246 = vmatpush.bf16.msra.mxu1 %v3511_v42  ;;  %v3300_v42 = vld [vmem:[#allocation4 + $0x38] sm:$0xf0]  ;;  %v3719_v46 = vor.u32 %v4805_v37, %v3716_v38  ;;  %v4949_v35 = vld [vmem:[#allocation4 + $0x7ec] sm:$0xf]  ;;  %v4023_v37 = vor.u32 %v4881_v50, %v4020_v22 }
 0x136   :  { %2214 = vmatmul.bf16.vlgmr.msrb.gmra.mxu2 %v5362_v48  ;;  %v3540_v26 = vld [vmem:[#allocation4 + $0x218] sm:$0xf0]  ;;  %v4941_v9 = vld [vmem:[#allocation4 + $0x7ac] sm:$0xf] }
 0x137   :  { %2258 = vmatpush.bf16.msra.mxu2 %v3655_v47  ;;  %2227 = vmatmul.bf16.vlgmr.msrb.gmra.mxu3 %v5364_v54  ;;  %v4769_v47 = vld [vmem:[#allocation4 + $0x24c] sm:$0xf]  ;;  %v3543_v38 = vor.u32 %v4761_v25, %v3540_v26  ;;  %v4148_v53 = vld [vmem:[#allocation4 + $0x6d8] sm:$0xf0] }
 0x138   :  { %2271 = vmatpush.bf16.msra.mxu3 %v3783_v52  ;;  %2234 = vmatpush.bf16.msra.mxu0 %v3367_v55  ;;  %v3303_v52 = vor.u32 %v4701_v41, %v3300_v42  ;;  %v4697_v55 = vld [vmem:[#allocation4 + $0xc] sm:$0xf]  ;;  %v3876_v41 = vld [vmem:[#allocation4 + $0x4b8] sm:$0xf0] }
 0x139   :  { %2247 = vmatpush.bf16.msra.mxu1 %v3495_v58  ;;  %v5388_v51 = vpop.f32.mrf.mxu2  ;;  %v3284_v58 = vld [vmem:[#allocation4 + $0x18] sm:$0xf0]  ;;  %v4905_v50 = vld [vmem:[#allocation4 + $0x68c] sm:$0xf] }
 0x13a   :  { %v5390_v56 = vpop.f32.mrf.mxu3  ;;  %v3287_v11 = vor.u32 %v4697_v55, %v3284_v58  ;;  %v4945_v55 = vld [vmem:[#allocation4 + $0x7cc] sm:$0xf]  ;;  %v3988_v62 = vld [vmem:[#allocation4 + $0x598] sm:$0xf0] }
 0x13b   :  { %2259 = vmatpush.bf16.msra.mxu2 %v3639_v61  ;;  %v3575_v61 = vor.u32 %v4769_v47, %v3572_v49  ;;  %v5392_v2 = vpop.f32.mrf.mxu0  ;;  %v4937_v25 = vld [vmem:[#allocation4 + $0x78c] sm:$0xf] }
 0x13c   :  { %2272 = vmatpush.bf16.msra.mxu3 %v3767_v1  ;;  %2235 = vmatpush.bf16.msra.mxu0 %v3351_v6  ;;  %v4885_v1 = vld [vmem:[#allocation4 + $0x5ec] sm:$0xf]  ;;  %v4036_v6 = vld [vmem:[#allocation4 + $0x5f8] sm:$0xf0] }
 0x13d   :  { %2248 = vmatpush.bf16.msra.mxu1 %v3479_v10  ;;  %v5394_v10 = vpop.f32.mrf.mxu1  ;;  %v4039_v18 = vor.u32 %v4885_v1, %v4036_v6  ;;  %v4909_v1 = vld [vmem:[#allocation4 + $0x6ac] sm:$0xf] }
 0x13f   :  { %2260 = vmatpush.bf16.msra.mxu2 %v3623_v14  ;;  %v3684_v14 = vld [vmem:[#allocation4 + $0x338] sm:$0xf0] }
 0x140   :  { %2273 = vmatpush.bf16.msra.mxu3 %v3751_v17  ;;  %2236 = vmatpush.bf16.msra.mxu0 %v3335_v21  ;;  %v4849_v17 = vld [vmem:[#allocation4 + $0x4cc] sm:$0xf]  ;;  %v3892_v21 = vld [vmem:[#allocation4 + $0x4d8] sm:$0xf0] }
 0x141   :  { %2249 = vmatpush.bf16.msra.mxu1 %v3463_v24  ;;  %v3687_v24 = vor.u32 %v4797_v12, %v3684_v14  ;;  %v1957_v28 = vpop.f32.mrf.mxu2  ;;  %v3895_v33 = vor.u32 %v4849_v17, %v3892_v21  ;;  %v4837_v14 = vld [vmem:[#allocation4 + $0x46c] sm:$0xf] }
 0x142   :  { %v1970_v32 = vpop.f32.mrf.mxu3  ;;  %v4869_v17 = vld [vmem:[#allocation4 + $0x56c] sm:$0xf]  ;;  %v3828_v28 = vld [vmem:[#allocation4 + $0x458] sm:$0xf0] }
 0x143   :  { %2261 = vmatpush.bf16.msra.mxu2 %v3607_v27  ;;  %v4793_v27 = vld [vmem:[#allocation4 + $0x30c] sm:$0xf]  ;;  %v1983_v42 = vpop.f32.mrf.mxu0  ;;  %v3956_v32 = vld [vmem:[#allocation4 + $0x558] sm:$0xf0] }
 0x144   :  { %2274 = vmatpush.bf16.msra.mxu3 %v3735_v31  ;;  %2237 = vmatpush.bf16.msra.mxu0 %v3319_v36  ;;  %v4164_v31 = vld [vmem:[#allocation4 + $0x6f8] sm:$0xf0] }
 0x145   :  { %2250 = vmatpush.bf16.msra.mxu1 %v3447_v39  ;;  %v4292_v36 = vld [vmem:[#allocation4 + $0x7f8] sm:$0xf0]  ;;  %v4845_v39 = vld [vmem:[#allocation4 + $0x4ac] sm:$0xf]  ;;  %v4167_v44 = vor.u32 %v4917_v30, %v4164_v31  ;;  %v1996_v47 = vpop.f32.mrf.mxu1 }
 0x146   :  { %v4295_v49 = vor.u32 %v4949_v35, %v4292_v36  ;;  %v3879_v23 = vor.u32 %v4845_v39, %v3876_v41  ;;  %v4865_v31 = vld [vmem:[#allocation4 + $0x54c] sm:$0xf]  ;;  %v4228_v42 = vld [vmem:[#allocation4 + $0x778] sm:$0xf0] }
 0x147   :  { %2262 = vmatpush.bf16.msra.mxu2 %v3591_v43  ;;  %v3671_v43 = vor.u32 %v4793_v27, %v3668_v29  ;;  %v4833_v27 = vld [vmem:[#allocation4 + $0x44c] sm:$0xf]  ;;  %v5411_v29 = vld [vmem:[%s5480_s8 + $0x8] sm:$0xf] }
 0x148   :  { %2275 = vmatpush.bf16.msra.mxu3 %v3719_v46  ;;  %2238 = vmatpush.bf16.msra.mxu0 %v3303_v52  ;;  %v4004_v46 = vld [vmem:[#allocation4 + $0x5b8] sm:$0xf0]  ;;  %v4913_v52 = vld [vmem:[#allocation4 + $0x6cc] sm:$0xf]  ;;  %v3831_v39 = vor.u32 %v4833_v27, %v3828_v28 }
 0x149   :  { %2251 = vmatpush.bf16.msra.mxu1 %v3431_v57  ;;  %v4276_v57 = vld [vmem:[#allocation4 + $0x7d8] sm:$0xf0]  ;;  %v4007_v58 = vor.u32 %v4877_v45, %v4004_v46  ;;  %v4151_v60 = vor.u32 %v4913_v52, %v4148_v53  ;;  %v4901_v36 = vld [vmem:[#allocation4 + $0x66c] sm:$0xf] }
 0x14a   :  { %v4279_v63 = vor.u32 %v4945_v55, %v4276_v57  ;;  %v5400_v6 = vpop.f32.mrf.mxu3  ;;  %v4933_v41 = vld [vmem:[#allocation4 + $0x76c] sm:$0xf]  ;;  %v3812_v46 = vld [vmem:[#allocation4 + $0x438] sm:$0xf0] }
 0x14b   :  { %2263 = vmatpush.bf16.msra.mxu2 %v3575_v61  ;;  %v4873_v61 = vld [vmem:[#allocation4 + $0x58c] sm:$0xf]  ;;  %v3940_v52 = vld [vmem:[#allocation4 + $0x538] sm:$0xf0] }
 0x14c   :  { %2276 = vmatpush.bf16.msra.mxu3 %v3703_v4  ;;  %2239 = vmatpush.bf16.msra.mxu0 %v3287_v11  ;;  %v4132_v4 = vld [vmem:[#allocation4 + $0x6b8] sm:$0xf0]  ;;  %v3991_v12 = vor.u32 %v4873_v61, %v3988_v62  ;;  %v4829_v45 = vld [vmem:[#allocation4 + $0x42c] sm:$0xf] }
 0x14d   :  { %2252 = vmatpush.bf16.msra.mxu1 %v3415_v15  ;;  %v4260_v11 = vld [vmem:[#allocation4 + $0x7b8] sm:$0xf0]  ;;  %v4897_v55 = vld [vmem:[#allocation4 + $0x64c] sm:$0xf] }
 0x14e   :  { %v3844_v15 = vld [vmem:[#allocation4 + $0x478] sm:$0xf0]  ;;  %v4263_v21 = vor.u32 %v4941_v9, %v4260_v11  ;;  %v4825_v61 = vld [vmem:[#allocation4 + $0x40c] sm:$0xf]  ;;  %v4354_v11 = vld [vmem:[#allocation6 + $0x70] sm:$0xf] }
 0x14f   :  { %2264 = vmatpush.bf16.msra.mxu2 %v3559_v19  ;;  %2240 = vmatmul.bf16.vlgmr.msra.gmra.mxu0 %v5340_v3  ;;  %v3860_v3 = vld [vmem:[#allocation4 + $0x498] sm:$0xf0]  ;;  %v5404_v19 = vpop.f32.mrf.mxu0  ;;  %v5406_v22 = vpop.f32.mrf.mxu1 }
 0x150   :  { %2284 = vmatpush.bf16.msrb.mxu0 %v3911_v16  ;;  %2277 = vmatpush.bf16.msra.mxu3 %v3687_v24  ;;  %v3863_v7 = vor.u32 %v4841_v59, %v3860_v3  ;;  %v4135_v16 = vor.u32 %v4909_v1, %v4132_v4  ;;  %v3847_v24 = vor.u32 %v4837_v14, %v3844_v15  ;;  %v4084_v57 = vld [vmem:[#allocation4 + $0x658] sm:$0xf0]  ;;  %v4929_v3 = vld [vmem:[#allocation4 + $0x74c] sm:$0xf]  ;;  %v4418_v14 = vld [vmem:[#allocation6 + $0xf0] sm:$0xf] }
 0x151   :  { %2297 = vmatpush.bf16.msrb.mxu1 %v4039_v18  ;;  %v3972_v18 = vld [vmem:[#allocation4 + $0x578] sm:$0xf0]  ;;  %v3815_v59 = vor.u32 %v4829_v45, %v3812_v46  ;;  %v4857_v4 = vld [vmem:[#allocation4 + $0x50c] sm:$0xf]  ;;  %v4087_v9 = vor.u32 %v4897_v55, %v4084_v57  ;;  %v4963_v45 = vld [vmem:[#allocation6 + $0x54] sm:$0xf0] }
 0x152   :  { %2253 = vmatmul.bf16.vlgmr.msra.gmra.mxu1 %v5342_v8  ;;  %v5398_v8 = vpop.f32.mrf.mxu2  ;;  %v3975_v26 = vor.u32 %v4869_v17, %v3972_v18  ;;  %v3796_v1 = vld [vmem:[#allocation4 + $0x418] sm:$0xf0]  ;;  %v4893_v17 = vld [vmem:[#allocation4 + $0x62c] sm:$0xf] }
 0x153   :  { %2265 = vmatpush.bf16.msra.mxu2 %v3543_v38  ;;  %v2022_v38 = vpop.f32.mrf.mxu3  ;;  %v4068_v18 = vld [vmem:[#allocation4 + $0x638] sm:$0xf0] }
 0x154   :  { %2285 = vmatpush.bf16.msrb.mxu0 %v3895_v33  ;;  %2278 = vmatpush.bf16.msra.mxu3 %v3671_v43  ;;  %v632_v43 = vperm.slane %v5411_v29, 0  ;;  %v4071_v28 = vor.u32 %v4893_v17, %v4068_v18  ;;  %v4052_v38 = vld [vmem:[#allocation4 + $0x618] sm:$0xf0]  ;;  %v4973_v17 = vld [vmem:[#allocation6 + $0xa4] sm:$0xf0] }
 0x155   :  { %2298 = vmatpush.bf16.msrb.mxu1 %v4023_v37  ;;  %v4100_v37 = vld [vmem:[#allocation4 + $0x678] sm:$0xf0]  ;;  %v4482_v18 = vld [vmem:[#allocation6 + $0x170] sm:$0xf] }
 0x156   :  { %2266 = vmatmul.bf16.vlgmr.msra.gmra.mxu2 %v5348_v34  ;;  %v4116_v34 = vld [vmem:[#allocation4 + $0x698] sm:$0xf0]  ;;  %v4103_v47 = vor.u32 %v4901_v36, %v4100_v37  ;;  %v1930_v62 = vadd.f32 %v5382_v0, %v632_v43  ;;  %v3799_v0 = vor.u32 %v4825_v61, %v3796_v1  ;;  %v4981_v36 = vld [vmem:[#allocation6 + $0xe4] sm:$0xf0]  ;;  %v4889_v37 = vld [vmem:[#allocation4 + $0x60c] sm:$0xf] }
 0x157   :  { %2310 = vmatpush.bf16.msrb.mxu2 %v4167_v44  ;;  %2279 = vmatmul.bf16.vlgmr.msra.gmra.mxu3 %v5350_v40  ;;  %v4244_v40 = vld [vmem:[#allocation4 + $0x798] sm:$0xf0]  ;;  %v4119_v30 = vor.u32 %v4905_v50, %v4116_v34  ;;  %v3959_v44 = vor.u32 %v4865_v31, %v3956_v32  ;;  %v2035_v53 = vpop.f32.mrf.mxu0  ;;  %v4925_v34 = vld [vmem:[#allocation4 + $0x72c] sm:$0xf]  ;;  %v4965_v31 = vld [vmem:[#allocation6 + $0x64] sm:$0xf0]  ;;  %v4055_v43 = vor.u32 %v4889_v37, %v4052_v38 }
 0x158   :  { %2323 = vmatpush.bf16.msrb.mxu3 %v4295_v49  ;;  %2286 = vmatpush.bf16.msrb.mxu0 %v3879_v23  ;;  %v4247_v35 = vor.u32 %v4937_v25, %v4244_v40  ;;  %v4861_v49 = vld [vmem:[#allocation4 + $0x52c] sm:$0xf]  ;;  %v4231_v23 = vor.u32 %v4933_v41, %v4228_v42  ;;  %v1943_v25 = vadd.f32 %v5385_v5, %v1930_v62  ;;  %v4410_v32 = vld [vmem:[#allocation6 + $0xe0] sm:$0xf]  ;;  %v4180_v41 = vld [vmem:[#allocation4 + $0x718] sm:$0xf0] }
 0x159   :  { %2299 = vmatpush.bf16.msrb.mxu1 %v4007_v58  ;;  %v2048_v58 = vpop.f32.mrf.mxu1  ;;  %v4411_v42 = vor.u32 %v4981_v36, %v4410_v32  ;;  %v4322_v62 = vld [vmem:[#allocation6 + $0x30] sm:$0xf]  ;;  %v4298_v36 = vld [vmem:[#allocation6] sm:$0xf] }
 0x15a   :  { %v2009_v33 = vpop.f32.mrf.mxu2  ;;  %v4330_v58 = vld [vmem:[#allocation6 + $0x40] sm:$0xf] }
 0x15b   :  { %2311 = vmatpush.bf16.msrb.mxu2 %v4151_v60  ;;  %v4212_v60 = vld [vmem:[#allocation4 + $0x758] sm:$0xf0]  ;;  %v5417_v50 = vpop.f32.mrf.mxu3  ;;  %v1956_v33 = vadd.f32 %v5388_v51, %v1943_v25  ;;  %v633_v51 = vperm.slane %v5411_v29, 1  ;;  %v4955_v25 = vld [vmem:[#allocation6 + $0x14] sm:$0xf0] }
 0x15c   :  { %2324 = vmatpush.bf16.msrb.mxu3 %v4279_v63  ;;  %2287 = vmatpush.bf16.msrb.mxu0 %v3863_v7  ;;  %v3943_v63 = vor.u32 %v4861_v49, %v3940_v52  ;;  %v3924_v7 = vld [vmem:[#allocation4 + $0x518] sm:$0xf0]  ;;  %v4215_v15 = vor.u32 %v4929_v3, %v4212_v60  ;;  %v4402_v49 = vld [vmem:[#allocation6 + $0xd0] sm:$0xf]  ;;  %v4979_v52 = vld [vmem:[#allocation6 + $0xd4] sm:$0xf0] }
 0x15d   :  { %2300 = vmatpush.bf16.msrb.mxu1 %v3991_v12  ;;  %v4967_v12 = vld [vmem:[#allocation6 + $0x74] sm:$0xf0]  ;;  %v3927_v40 = vor.u32 %v4857_v4, %v3924_v7  ;;  %v1969_v46 = vadd.f32 %v5390_v56, %v1956_v33  ;;  %v4403_v57 = vor.u32 %v4979_v52, %v4402_v49  ;;  %v2034_v3 = vadd.f32 %v5404_v19, %v633_v51  ;;  %v4977_v60 = vld [vmem:[#allocation6 + $0xc4] sm:$0xf0]  ;;  %v4362_v38 = vld [vmem:[#allocation6 + $0x80] sm:$0xf] }
 0x15e   :  { %v4975_v7 = vld [vmem:[#allocation6 + $0xb4] sm:$0xf0]  ;;  %v4420_v51 = vld [vmem:[#allocation6 + $0xf8] sm:$0xf0] }
 0x15f   :  { %2312 = vmatpush.bf16.msrb.mxu2 %v4135_v16  ;;  %v4983_v16 = vld [vmem:[#allocation6 + $0xf4] sm:$0xf0]  ;;  %v1982_v56 = vadd.f32 %v5392_v2, %v1969_v46  ;;  %v2047_v4 = vadd.f32 %v5406_v22, %v2034_v3  ;;  %v4386_v2 = vld [vmem:[#allocation6 + $0xb0] sm:$0xf]  ;;  %v4982_v46 = vld [vmem:[#allocation6 + $0xf4] sm:$0xf] }
 0x160   :  { %2325 = vmatpush.bf16.msrb.mxu3 %v4263_v21  ;;  %2288 = vmatpush.bf16.msrb.mxu0 %v3847_v24  ;;  %v4196_v24 = vld [vmem:[#allocation4 + $0x738] sm:$0xf0]  ;;  %v4419_v27 = vor.u32 %v4983_v16, %v4418_v14  ;;  %v4314_v14 = vld [vmem:[#allocation6 + $0x20] sm:$0xf]  ;;  %v4348_v3 = vld [vmem:[#allocation6 + $0x68] sm:$0xf0] }
 0x161   :  { %2301 = vmatpush.bf16.msrb.mxu1 %v3975_v26  ;;  %v4355_v26 = vor.u32 %v4967_v12, %v4354_v11  ;;  %v1995_v1 = vadd.f32 %v5394_v10, %v1982_v56  ;;  %v4378_v16 = vld [vmem:[#allocation6 + $0xa0] sm:$0xf]  ;;  %v4999_v10 = vld [vmem:[#allocation6 + $0x174] sm:$0xf0]  ;;  %v4423_v56 = vor.u32 %v4982_v46, %v4420_v51  ;;  %v4484_v46 = vld [vmem:[#allocation6 + $0x178] sm:$0xf0] }
 0x162   :  { %v5415_v21 = vpop.f32.mrf.mxu2 }
 0x163   :  { %2313 = vmatpush.bf16.msrb.mxu2 %v4119_v30  ;;  %v4346_v30 = vld [vmem:[#allocation6 + $0x60] sm:$0xf]  ;;  %v2060_v11 = vadd.f32 %v5415_v21, %v2047_v4  ;;  %v4379_v21 = vor.u32 %v4973_v17, %v4378_v16  ;;  %v4989_v17 = vld [vmem:[#allocation6 + $0x124] sm:$0xf0] }
 0x164   :  { %2326 = vmatpush.bf16.msrb.mxu3 %v4247_v35  ;;  %2289 = vmatpush.bf16.msrb.mxu0 %v3831_v39  ;;  %v4199_v35 = vor.u32 %v4925_v34, %v4196_v24  ;;  %v4921_v39 = vld [vmem:[#allocation4 + $0x70c] sm:$0xf]  ;;  %v4347_v5 = vor.u32 %v4965_v31, %v4346_v30  ;;  %v4306_v24 = vld [vmem:[#allocation6 + $0x10] sm:$0xf]  ;;  %v4997_v30 = vld [vmem:[#allocation6 + $0x164] sm:$0xf0] }
 0x165   :  { %2302 = vmatpush.bf16.msrb.mxu1 %v3959_v44  ;;  %v4338_v44 = vld [vmem:[#allocation6 + $0x50] sm:$0xf]  ;;  %v2073_v34 = vadd.f32 %v5417_v50, %v2060_v11  ;;  %v4953_v50 = vld [vmem:[#allocation6 + $0x4] sm:$0xf0]  ;;  %v4962_v11 = vld [vmem:[#allocation6 + $0x54] sm:$0xf] }
 0x166   :  { %v4339_v55 = vor.u32 %v4963_v45, %v4338_v44  ;;  %v4995_v44 = vld [vmem:[#allocation6 + $0x154] sm:$0xf0]  ;;  %v4442_v16 = vld [vmem:[#allocation6 + $0x120] sm:$0xf] }
 0x167   :  { %2314 = vmatpush.bf16.msrb.mxu2 %v4103_v47  ;;  %v4183_v47 = vor.u32 %v4921_v39, %v4180_v41  ;;  %v4969_v39 = vld [vmem:[#allocation6 + $0x84] sm:$0xf0]  ;;  %v4966_v41 = vld [vmem:[#allocation6 + $0x74] sm:$0xf] }
 0x168   :  { %2327 = vmatpush.bf16.msrb.mxu3 %v4231_v23  ;;  %2290 = vmatpush.bf16.msrb.mxu0 %v3815_v59  ;;  %v2074_v23 = vpop.f32.mrf.mxu3  ;;  %v4961_v59 = vld [vmem:[#allocation6 + $0x44] sm:$0xf0] }
 0x169   :  { %2303 = vmatpush.bf16.msrb.mxu1 %v3943_v63  ;;  %v4959_v63 = vld [vmem:[#allocation6 + $0x34] sm:$0xf0] }
 0x16a   :  { %v2061_v53 = vpop.f32.mrf.mxu2  ;;  %v4323_v12 = vor.u32 %v4959_v63, %v4322_v62 }
 0x16b   :  { %2315 = vmatpush.bf16.msrb.mxu2 %v4087_v9  ;;  %v2008_v9 = vadd.f32 %v5398_v8, %v1995_v1  ;;  %v4299_v53 = vor.u32 %v4953_v50, %v4298_v36  ;;  %v4426_v36 = vld [vmem:[#allocation6 + $0x100] sm:$0xf]  ;;  %v4985_v50 = vld [vmem:[#allocation6 + $0x104] sm:$0xf0] }
 0x16c   :  { %2328 = vmatpush.bf16.msrb.mxu3 %v4215_v15  ;;  %2291 = vmatpush.bf16.msrb.mxu0 %v3799_v0  ;;  %v2085_v19 = vpop.f32.mrf.mxu0  ;;  %v4957_v15 = vld [vmem:[#allocation6 + $0x24] sm:$0xf0]  ;;  %v4483_v0 = vor.u32 %v4999_v10, %v4482_v18 }
 0x16d   :  { %2304 = vmatpush.bf16.msrb.mxu1 %v3927_v40  ;;  %v2021_v22 = vadd.f32 %v5400_v6, %v2008_v9  ;;  %v4315_v8 = vor.u32 %v4957_v15, %v4314_v14  ;;  %v4370_v40 = vld [vmem:[#allocation6 + $0x90] sm:$0xf]  ;;  %v4307_v6 = vor.u32 %v4955_v25, %v4306_v24  ;;  %v4404_v15 = vld [vmem:[#allocation6 + $0xd8] sm:$0xf0]  ;;  %v4976_v24 = vld [vmem:[#allocation6 + $0xc4] sm:$0xf] }
 0x16e   :  { %v4396_v25 = vld [vmem:[#allocation6 + $0xc8] sm:$0xf0] }
 0x16f   :  { %2316 = vmatpush.bf16.msrb.mxu2 %v4071_v28  ;;  %2292 = vmatmul.bf16.vlgmr.msrb.gmra.mxu0 %v5356_v13  ;;  %v4394_v13 = vld [vmem:[#allocation6 + $0xc0] sm:$0xf]  ;;  %v2336_v33 = vmul.f32 0.1, %v2021_v22 }
 0x170   :  { %2738 = vmatpush.bf16.msra.mxu0 %v4355_v26  ;;  %2329 = vmatpush.bf16.msrb.mxu3 %v4199_v35  ;;  %v4395_v61 = vor.u32 %v4977_v60, %v4394_v13  ;;  %v2086_v26 = vadd.f32 %v2085_v19, %v2073_v34  ;;  %v4474_v28 = vld [vmem:[#allocation6 + $0x160] sm:$0xf]  ;;  %v4993_v60 = vld [vmem:[#allocation6 + $0x144] sm:$0xf0]  ;;  %v4960_v34 = vld [vmem:[#allocation6 + $0x44] sm:$0xf] }
 0x171   :  { %2751 = vmatpush.bf16.msra.mxu1 %v4419_v27  ;;  %v4971_v27 = vld [vmem:[#allocation6 + $0x94] sm:$0xf0]  ;;  %v4475_v32 = vor.u32 %v4997_v30, %v4474_v28  ;;  %v2340_v23 = vmax.f32 %v2021_v22, %v2336_v33  ;;  %v4458_v13 = vld [vmem:[#allocation6 + $0x140] sm:$0xf]  ;;  %v4324_v28 = vld [vmem:[#allocation6 + $0x38] sm:$0xf0] }
 0x172   :  { %2305 = vmatmul.bf16.vlgmr.msrb.gmra.mxu1 %v5358_v20  ;;  %v4331_v20 = vor.u32 %v4961_v59, %v4330_v58  ;;  %v4371_v37 = vor.u32 %v4971_v27, %v4370_v40  ;;  %v4964_v58 = vld [vmem:[#allocation6 + $0x64] sm:$0xf]  ;;  %v4459_v62 = vor.u32 %v4993_v60, %v4458_v13  ;;  %v4399_v27 = vor.u32 %v4976_v24, %v4396_v25  ;;  %v4434_v30 = vld [vmem:[#allocation6 + $0x110] sm:$0xf]  ;;  %v4388_v33 = vld [vmem:[#allocation6 + $0xb8] sm:$0xf0] }
 0x173   :  { %2317 = vmatpush.bf16.msrb.mxu2 %v4055_v43  ;;  %v4466_v43 = vld [vmem:[#allocation6 + $0x150] sm:$0xf]  ;;  %v5435_v1 = vpack.c.bf16 %v2340_v23, %v2340_v23  ;;  %v4351_v4 = vor.u32 %v4964_v58, %v4348_v3  ;;  %v4970_v23 = vld [vmem:[#allocation6 + $0x94] sm:$0xf]  ;;  %v4476_v58 = vld [vmem:[#allocation6 + $0x168] sm:$0xf0] }
 0x174   :  { %2739 = vmatpush.bf16.msra.mxu0 %v4347_v5  ;;  %2330 = vmatpush.bf16.msrb.mxu3 %v4183_v47  ;;  %v2087_v31 = vpop.f32.mrf.mxu0  ;;  %v4467_v47 = vor.u32 %v4995_v44, %v4466_v43  ;;  %v4427_v43 = vor.u32 %v4985_v50, %v4426_v36  ;;  %v4380_v44 = vld [vmem:[#allocation6 + $0xa8] sm:$0xf0]  ;;  %v4986_v25 = vld [vmem:[#allocation6 + $0x114] sm:$0xf]  ;;  %v5015_v36 = vld [vmem:[#allocation6 + $0x1f4] sm:$0xf0] }
 0x175   :  { %2752 = vmatpush.bf16.msra.mxu1 %v4411_v42  ;;  %v4356_v42 = vld [vmem:[#allocation6 + $0x78] sm:$0xf0]  ;;  %v4987_v31 = vld [vmem:[#allocation6 + $0x114] sm:$0xf0] }
 0x176   :  { %2318 = vmatmul.bf16.vlgmr.msrb.gmra.mxu2 %v5362_v48  ;;  %v2098_v48 = vpop.f32.mrf.mxu1 }
 0x177   :  { %2331 = vmatmul.bf16.vlgmr.msrb.gmra.mxu3 %v5364_v54  ;;  %v4387_v54 = vor.u32 %v4975_v7, %v4386_v2  ;;  %2764 = vmatpush.bf16.msra.mxu2 %v4483_v0  ;;  %v2099_v5 = vadd.f32 %v2098_v48, %v2086_v26  ;;  %v4450_v2 = vld [vmem:[#allocation6 + $0x130] sm:$0xf]  ;;  %v4991_v7 = vld [vmem:[#allocation6 + $0x134] sm:$0xf0]  ;;  %v4340_v48 = vld [vmem:[#allocation6 + $0x58] sm:$0xf0] }
 0x178   :  { %2740 = vmatpush.bf16.msra.mxu0 %v4339_v55  ;;  %v4363_v55 = vor.u32 %v4969_v39, %v4362_v38  ;;  %v4343_v0 = vor.u32 %v4962_v11, %v4340_v48  ;;  %v4958_v26 = vld [vmem:[#allocation6 + $0x34] sm:$0xf] }
 0x179   :  { %2753 = vmatpush.bf16.msra.mxu1 %v4403_v57  ;;  %v2111_v45 = vpop.f32.mrf.mxu2  ;;  %v4359_v57 = vor.u32 %v4966_v41, %v4356_v42  ;;  %v4327_v38 = vor.u32 %v4958_v26, %v4324_v28  ;;  %v4956_v41 = vld [vmem:[#allocation6 + $0x24] sm:$0xf] }
 0x17a   :  { %v2112_v49 = vadd.f32 %v2111_v45, %v2099_v5  ;;  %v2124_v52 = vpop.f32.mrf.mxu3  ;;  %v4316_v5 = vld [vmem:[#allocation6 + $0x28] sm:$0xf0]  ;;  %v4972_v42 = vld [vmem:[#allocation6 + $0xa4] sm:$0xf]  ;;  %v4998_v45 = vld [vmem:[#allocation6 + $0x174] sm:$0xf] }
 0x17b   :  { %2765 = vmatpush.bf16.msra.mxu2 %v4475_v32  ;;  %v4974_v32 = vld [vmem:[#allocation6 + $0xb4] sm:$0xf]  ;;  %v4487_v51 = vor.u32 %v4998_v45, %v4484_v46 }
 0x17c   :  { %2741 = vmatpush.bf16.msra.mxu0 %v4331_v20  ;;  %v2125_v59 = vadd.f32 %v2124_v52, %v2112_v49  ;;  %v4980_v20 = vld [vmem:[#allocation6 + $0xe4] sm:$0xf]  ;;  %v4391_v39 = vor.u32 %v4974_v32, %v4388_v33  ;;  %v4383_v49 = vor.u32 %v4972_v42, %v4380_v44  ;;  %v4954_v52 = vld [vmem:[#allocation6 + $0x14] sm:$0xf]  ;;  %v5011_v44 = vld [vmem:[#allocation6 + $0x1d4] sm:$0xf0] }
 0x17d   :  { %2754 = vmatpush.bf16.msra.mxu1 %v4395_v61  ;;  %v4412_v61 = vld [vmem:[#allocation6 + $0xe8] sm:$0xf0] }
 0x17e   :  { %v2100_v35 = vpop.f32.mrf.mxu1  ;;  %v2337_v63 = vmul.f32 0.1, %v2125_v59  ;;  %v4415_v9 = vor.u32 %v4980_v20, %v4412_v61  ;;  %v4952_v20 = vld [vmem:[#allocation6 + $0x4] sm:$0xf]  ;;  %v4300_v61 = vld [vmem:[#allocation6 + $0x8] sm:$0xf0] }
 0x17f   :  { %2766 = vmatpush.bf16.msra.mxu2 %v4467_v47  ;;  %v4435_v35 = vor.u32 %v4987_v31, %v4434_v30  ;;  %v4319_v47 = vor.u32 %v4956_v41, %v4316_v5  ;;  %v4303_v11 = vor.u32 %v4952_v20, %v4300_v61  ;;  %v4984_v30 = vld [vmem:[#allocation6 + $0x104] sm:$0xf]  ;;  %v4428_v31 = vld [vmem:[#allocation6 + $0x108] sm:$0xf0] }
 0x180   :  { %2742 = vmatpush.bf16.msra.mxu0 %v4323_v12  ;;  %v2341_v19 = vmax.f32 %v2125_v59, %v2337_v63  ;;  %v4978_v12 = vld [vmem:[#allocation6 + $0xd4] sm:$0xf]  ;;  %v4364_v63 = vld [vmem:[#allocation6 + $0x88] sm:$0xf0]  ;;  %v4431_v33 = vor.u32 %v4984_v30, %v4428_v31  ;;  %v635_v30 = vperm.slane %v5411_v29, 3 }
 0x181   :  { %2755 = vmatpush.bf16.msra.mxu1 %v4387_v54  ;;  %v4451_v54 = vor.u32 %v4991_v7, %v4450_v2  ;;  %v2113_v14 = vpop.f32.mrf.mxu2  ;;  %v4407_v22 = vor.u32 %v4978_v12, %v4404_v15  ;;  %v4468_v2 = vld [vmem:[#allocation6 + $0x158] sm:$0xf0]  ;;  %v4992_v12 = vld [vmem:[#allocation6 + $0x144] sm:$0xf]  ;;  %v4990_v15 = vld [vmem:[#allocation6 + $0x134] sm:$0xf] }
 0x182   :  { %v5438_v18 = vpack.c.bf16 %v2341_v19, %v2341_v19  ;;  %v2126_v10 = vpop.f32.mrf.mxu3 }
 0x183   :  { %2767 = vmatpush.bf16.msra.mxu2 %v4459_v62  ;;  %v4968_v62 = vld [vmem:[#allocation6 + $0x84] sm:$0xf] }
 0x184   :  { %2743 = vmatpush.bf16.msra.mxu0 %v4315_v8  ;;  %v4332_v8 = vld [vmem:[#allocation6 + $0x48] sm:$0xf0]  ;;  %v4367_v48 = vor.u32 %v4968_v62, %v4364_v63  ;;  %v4498_v63 = vld [vmem:[#allocation6 + $0x190] sm:$0xf] }
 0x185   :  { %2756 = vmatpush.bf16.msra.mxu1 %v4379_v21  ;;  %v4443_v21 = vor.u32 %v4989_v17, %v4442_v16  ;;  %v4335_v40 = vor.u32 %v4960_v34, %v4332_v8  ;;  %v4452_v16 = vld [vmem:[#allocation6 + $0x138] sm:$0xf0]  ;;  %v634_v17 = vperm.slane %v5411_v29, 2  ;;  %v4444_v34 = vld [vmem:[#allocation6 + $0x128] sm:$0xf0] }
 0x187   :  { %2768 = vmatpush.bf16.msra.mxu2 %v4451_v54  ;;  %v4460_v54 = vld [vmem:[#allocation6 + $0x148] sm:$0xf0] }
 0x188   :  { %2744 = vmatpush.bf16.msra.mxu0 %v4307_v6  ;;  %v4463_v14 = vor.u32 %v4992_v12, %v4460_v54  ;;  %v5014_v12 = vld [vmem:[#allocation6 + $0x1f4] sm:$0xf]  ;;  %v4548_v54 = vld [vmem:[#allocation6 + $0x1f8] sm:$0xf0] }
 0x189   :  { %2757 = vmatpush.bf16.msra.mxu1 %v4371_v37 }
 0x18b   :  { %2769 = vmatpush.bf16.msra.mxu2 %v4443_v21 }
 0x18c   :  { %2745 = vmatpush.bf16.msra.mxu0 %v4299_v53  ;;  %v5441_v6 = vpop.f32.mrf.mxu0  ;;  %v4308_v53 = vld [vmem:[#allocation6 + $0x18] sm:$0xf0] }
 0x18d   :  { %2758 = vmatpush.bf16.msra.mxu1 %v4363_v55  ;;  %v4372_v55 = vld [vmem:[#allocation6 + $0x98] sm:$0xf0]  ;;  %v4311_v13 = vor.u32 %v4954_v52, %v4308_v53  ;;  %v2138_v24 = vadd.f32 %v5441_v6, %v634_v17  ;;  %v4522_v52 = vld [vmem:[#allocation6 + $0x1c0] sm:$0xf]  ;;  %v5009_v53 = vld [vmem:[#allocation6 + $0x1c4] sm:$0xf0] }
 0x18e   :  { %v4375_v60 = vor.u32 %v4970_v23, %v4372_v55  ;;  %v4523_v23 = vor.u32 %v5009_v53, %v4522_v52 }
 0x18f   :  { %2746 = vmatmul.bf16.vlgmr.msra.gmra.mxu0 %v5435_v1  ;;  %v5443_v37 = vpop.f32.mrf.mxu1  ;;  %2770 = vmatpush.bf16.msra.mxu2 %v4435_v35  ;;  %v4546_v35 = vld [vmem:[#allocation6 + $0x1f0] sm:$0xf] }
 0x190   :  { %2790 = vmatpush.bf16.msrb.mxu0 %v4359_v57  ;;  %2759 = vmatmul.bf16.vlgmr.msra.gmra.mxu1 %v5438_v18  ;;  %v4996_v57 = vld [vmem:[#allocation6 + $0x164] sm:$0xf]  ;;  %v2151_v26 = vadd.f32 %v5443_v37, %v2138_v24 }
 0x191   :  { %2803 = vmatpush.bf16.msrb.mxu1 %v4423_v56  ;;  %v4479_v56 = vor.u32 %v4996_v57, %v4476_v58  ;;  %v4514_v57 = vld [vmem:[#allocation6 + $0x1b0] sm:$0xf]  ;;  %v5007_v58 = vld [vmem:[#allocation6 + $0x1b4] sm:$0xf0] }
 0x193   :  { %2771 = vmatpush.bf16.msra.mxu2 %v4427_v43  ;;  %v4530_v43 = vld [vmem:[#allocation6 + $0x1d0] sm:$0xf] }
 0x194   :  { %2791 = vmatpush.bf16.msrb.mxu0 %v4351_v4  ;;  %v2139_v59 = vpop.f32.mrf.mxu0  ;;  %v4994_v4 = vld [vmem:[#allocation6 + $0x154] sm:$0xf]  ;;  %v4531_v46 = vor.u32 %v5011_v44, %v4530_v43  ;;  %v4492_v43 = vld [vmem:[#allocation6 + $0x188] sm:$0xf0] }
 0x195   :  { %2804 = vmatpush.bf16.msrb.mxu1 %v4415_v9  ;;  %v4471_v19 = vor.u32 %v4994_v4, %v4468_v2  ;;  %v5003_v4 = vld [vmem:[#allocation6 + $0x194] sm:$0xf0] }
 0x196   :  { %v4499_v2 = vor.u32 %v5003_v4, %v4498_v63 }
 0x197   :  { %2816 = vmatpush.bf16.msrb.mxu2 %v4487_v51  ;;  %v2152_v3 = vpop.f32.mrf.mxu1 }
 0x198   :  { %2792 = vmatpush.bf16.msrb.mxu0 %v4343_v0  ;;  %v4455_v0 = vor.u32 %v4990_v15, %v4452_v16  ;;  %v4506_v3 = vld [vmem:[#allocation6 + $0x1a0] sm:$0xf]  ;;  %v5012_v15 = vld [vmem:[#allocation6 + $0x1e4] sm:$0xf]  ;;  %v4540_v16 = vld [vmem:[#allocation6 + $0x1e8] sm:$0xf0] }
 0x199   :  { %2805 = vmatpush.bf16.msrb.mxu1 %v4407_v22  ;;  %v2163_v7 = vpop.f32.mrf.mxu2  ;;  %v4988_v22 = vld [vmem:[#allocation6 + $0x124] sm:$0xf] }
 0x19a   :  { %v2176_v9 = vpop.f32.mrf.mxu3  ;;  %v4447_v21 = vor.u32 %v4988_v22, %v4444_v34  ;;  %v5010_v22 = vld [vmem:[#allocation6 + $0x1d4] sm:$0xf]  ;;  %v4532_v34 = vld [vmem:[#allocation6 + $0x1d8] sm:$0xf0] }
 0x19b   :  { %2817 = vmatpush.bf16.msrb.mxu2 %v4479_v56  ;;  %v4515_v56 = vor.u32 %v5007_v58, %v4514_v57 }
 0x19c   :  { %2793 = vmatpush.bf16.msrb.mxu0 %v4335_v40  ;;  %v4436_v40 = vld [vmem:[#allocation6 + $0x118] sm:$0xf0] }
 0x19d   :  { %2806 = vmatpush.bf16.msrb.mxu1 %v4399_v27  ;;  %v4439_v27 = vor.u32 %v4986_v25, %v4436_v40  ;;  %v5008_v25 = vld [vmem:[#allocation6 + $0x1c4] sm:$0xf]  ;;  %v4524_v40 = vld [vmem:[#allocation6 + $0x1c8] sm:$0xf0] }
 0x19f   :  { %2818 = vmatpush.bf16.msrb.mxu2 %v4471_v19  ;;  %v4490_v19 = vld [vmem:[#allocation6 + $0x180] sm:$0xf] }
 0x1a0   :  { %2794 = vmatpush.bf16.msrb.mxu0 %v4327_v38  ;;  %v4538_v38 = vld [vmem:[#allocation6 + $0x1e0] sm:$0xf] }
 0x1a1   :  { %2807 = vmatpush.bf16.msrb.mxu1 %v4391_v39  ;;  %v2165_v10 = vpop.f32.mrf.mxu2  ;;  %v5013_v39 = vld [vmem:[#allocation6 + $0x1e4] sm:$0xf0] }
 0x1a2   :  { %v2178_v8 = vpop.f32.mrf.mxu3  ;;  %v4539_v5 = vor.u32 %v5013_v39, %v4538_v38  ;;  %v4543_v10 = vor.u32 %v5012_v15, %v4540_v16  ;;  %v5022_v15 = vld [vmem:[#allocation7 + $0x30] sm:$0xff] }
 0x1a3   :  { %2819 = vmatpush.bf16.msrb.mxu2 %v4463_v14  ;;  %v4551_v14 = vor.u32 %v5014_v12, %v4548_v54  ;;  %v5023_v54 = vld [vmem:[#allocation7 + $0x38] sm:$0xff]  ;;  %v5030_v16 = vld [vmem:[#allocation7 + $0x70] sm:$0xff] }
 0x1a4   :  { %2795 = vmatpush.bf16.msrb.mxu0 %v4319_v47 }
 0x1a5   :  { %2808 = vmatpush.bf16.msrb.mxu1 %v4383_v49 }
 0x1a7   :  { %2820 = vmatpush.bf16.msrb.mxu2 %v4455_v0 }
 0x1a8   :  { %2796 = vmatpush.bf16.msrb.mxu0 %v4311_v13  ;;  %v5005_v13 = vld [vmem:[#allocation6 + $0x1a4] sm:$0xf0] }
 0x1a9   :  { %2809 = vmatpush.bf16.msrb.mxu1 %v4375_v60  ;;  %v4507_v62 = vor.u32 %v5005_v13, %v4506_v3  ;;  %v2348_v3 = vld [vmem:[%s5480_s8 + $0xc] sm:$0x3] }
 0x1aa   :  { %v2414_v13 = vperm.slane %v2348_v3, 0 }
 0x1ab   :  { %2821 = vmatpush.bf16.msrb.mxu2 %v4447_v21  ;;  %v4535_v21 = vor.u32 %v5010_v22, %v4532_v34  ;;  %v5019_v22 = vld [vmem:[#allocation7 + $0x18] sm:$0xff] }
 0x1ac   :  { %2797 = vmatpush.bf16.msrb.mxu0 %v4303_v11  ;;  %v2189_v28 = vpop.f32.mrf.mxu0 }
 0x1ad   :  { %2810 = vmatpush.bf16.msrb.mxu1 %v4367_v48 }
 0x1af   :  { %2798 = vmatmul.bf16.vlgmr.msrb.gmra.mxu0 %v5435_v1  ;;  %v2164_v1 = vadd.f32 %v2163_v7, %v2151_v26  ;;  %v2202_v32 = vpop.f32.mrf.mxu1  ;;  %2822 = vmatpush.bf16.msrb.mxu2 %v4439_v27  ;;  %v4527_v26 = vor.u32 %v5008_v25, %v4524_v40  ;;  %v5006_v27 = vld [vmem:[#allocation6 + $0x1b4] sm:$0xf]  ;;  %v5017_v25 = vld [vmem:[#allocation7 + $0x8] sm:$0xff] }
 0x1b0   :  { %2811 = vmatmul.bf16.vlgmr.msrb.gmra.mxu1 %v5438_v18  ;;  %v4547_v18 = vor.u32 %v5015_v36, %v4546_v35  ;;  %2980 = vmatpush.bf16.msra.mxu0 %v5023_v54  ;;  %v5029_v40 = vld [vmem:[#allocation7 + $0x68] sm:$0xff] }
 0x1b1   :  { %v2177_v50 = vadd.f32 %v2176_v9, %v2164_v1  ;;  %v5001_v9 = vld [vmem:[#allocation6 + $0x184] sm:$0xf0] }
 0x1b2   :  { %2777 = vmatpush.bf16.msra.mxu3 %v4547_v18  ;;  %v4491_v48 = vor.u32 %v5001_v9, %v4490_v19 }
 0x1b3   :  { %2823 = vmatpush.bf16.msrb.mxu2 %v4431_v33  ;;  %v2190_v6 = vadd.f32 %v2189_v28, %v2177_v50  ;;  %v4516_v28 = vld [vmem:[#allocation6 + $0x1b8] sm:$0xf0]  ;;  %v4508_v33 = vld [vmem:[#allocation6 + $0x1a8] sm:$0xf0]  ;;  %v5002_v50 = vld [vmem:[#allocation6 + $0x194] sm:$0xf] }
 0x1b4   :  { %v2191_v41 = vpop.f32.mrf.mxu0  ;;  %v4519_v1 = vor.u32 %v5006_v27, %v4516_v28  ;;  %2981 = vmatpush.bf16.msra.mxu0 %v5022_v15  ;;  %v5028_v27 = vld [vmem:[#allocation7 + $0x60] sm:$0xff]  ;;  %v5027_v28 = vld [vmem:[#allocation7 + $0x58] sm:$0xff] }
 0x1b5   :  { %v2203_v42 = vadd.f32 %v2202_v32, %v2190_v6  ;;  %v5004_v32 = vld [vmem:[#allocation6 + $0x1a4] sm:$0xf]  ;;  %v4500_v6 = vld [vmem:[#allocation6 + $0x198] sm:$0xf0] }
 0x1b6   :  { %2778 = vmatpush.bf16.msra.mxu3 %v4539_v5  ;;  %v4511_v36 = vor.u32 %v5004_v32, %v4508_v33  ;;  %v4503_v39 = vor.u32 %v5002_v50, %v4500_v6  ;;  %v5039_v32 = vld [vmem:[#allocation9 + $0x38] sm:$0xff]  ;;  %v5038_v33 = vld [vmem:[#allocation9 + $0x30] sm:$0xff] }
 0x1b7   :  { %v2204_v37 = vpop.f32.mrf.mxu1 }
 0x1b9   :  { %v2215_v45 = vpop.f32.mrf.mxu2 }
 0x1ba   :  { %v2216_v51 = vadd.f32 %v2215_v45, %v2203_v42  ;;  %v2228_v47 = vpop.f32.mrf.mxu3  ;;  %2779 = vmatpush.bf16.msra.mxu3 %v4531_v46  ;;  %v5000_v42 = vld [vmem:[#allocation6 + $0x184] sm:$0xf] }
 0x1bb   :  { %v4495_v29 = vor.u32 %v5000_v42, %v4492_v43 }
 0x1bc   :  { %v2229_v49 = vadd.f32 %v2228_v47, %v2216_v51 }
 0x1be   :  { %v2338_v55 = vmul.f32 0.1, %v2229_v49  ;;  %2780 = vmatpush.bf16.msra.mxu3 %v4523_v23 }
 0x1c0   :  { %v2342_v59 = vmax.f32 %v2229_v49, %v2338_v55 }
 0x1c1   :  { %v2217_v60 = vpop.f32.mrf.mxu2 }
 0x1c2   :  { %v2346_v20 = vpack.c.bf16 %v2342_v59, %v2342_v59  ;;  %v2230_v61 = vpop.f32.mrf.mxu3  ;;  %2781 = vmatpush.bf16.msra.mxu3 %v4515_v56 }
 0x1c4   :  { %2772 = vmatmul.bf16.vlgmr.msra.gmra.mxu2 %v2346_v20 }
 0x1c5   :  { %3077 = vmatpush.bf16.msra.mxu2 %v5039_v32 }
 0x1c6   :  { %2782 = vmatpush.bf16.msra.mxu3 %v4507_v62 }
 0x1c9   :  { %3078 = vmatpush.bf16.msra.mxu2 %v5038_v33 }
 0x1ca   :  { %2783 = vmatpush.bf16.msra.mxu3 %v4499_v2  ;;  %v2415_v2 = vperm.slane %v2348_v3, 1  ;;  %v5062_v3 = vld [vmem:[%s5480_s8 + $0xe] ss:$0 sm:$0xff] }
 0x1cc   :  { %v2241_v7 = vpop.f32.mrf.mxu0 }
 0x1cd   :  { %v2242_v18 = vadd.f32 %v2241_v7, %v635_v30  ;;  %v5026_v30 = vld [vmem:[#allocation7 + $0x50] sm:$0xff] }
 0x1ce   :  { %2784 = vmatpush.bf16.msra.mxu3 %v4491_v48 }
 0x1cf   :  { %v2254_v11 = vpop.f32.mrf.mxu1 }
 0x1d0   :  { %v2255_v38 = vadd.f32 %v2254_v11, %v2242_v18 }
 0x1d2   :  { %2829 = vmatpush.bf16.msrb.mxu3 %v4551_v14  ;;  %v5031_v14 = vld [vmem:[#allocation7 + $0x78] sm:$0xff] }
 0x1d3   :  { %2993 = vmatpush.bf16.msra.mxu1 %v5031_v14 }
 0x1d4   :  { %v2243_v17 = vpop.f32.mrf.mxu0  ;;  %2824 = vmatmul.bf16.vlgmr.msrb.gmra.mxu2 %v2346_v20 }
 0x1d5   :  { %v5021_v17 = vld [vmem:[#allocation7 + $0x28] sm:$0xff] }
 0x1d6   :  { %2830 = vmatpush.bf16.msrb.mxu3 %v4543_v10  ;;  %2982 = vmatpush.bf16.msra.mxu0 %v5021_v17 }
 0x1d7   :  { %v2256_v0 = vpop.f32.mrf.mxu1  ;;  %2994 = vmatpush.bf16.msra.mxu1 %v5030_v16  ;;  %v5064_v16 = vld [vmem:[%s5480_s8 + $0x10] ss:$0 sm:$0xff] }
 0x1d8   :  { %v5020_v0 = vld [vmem:[#allocation7 + $0x20] sm:$0xff] }
 0x1d9   :  { %v2267_v8 = vpop.f32.mrf.mxu2 }
 0x1da   :  { %v2280_v24 = vpop.f32.mrf.mxu3  ;;  %2831 = vmatpush.bf16.msrb.mxu3 %v4535_v21  ;;  %v2268_v5 = vadd.f32 %v2267_v8, %v2255_v38  ;;  %2983 = vmatpush.bf16.msra.mxu0 %v5020_v0  ;;  %v5018_v8 = vld [vmem:[#allocation7 + $0x10] sm:$0xff] }
 0x1db   :  { %2995 = vmatpush.bf16.msra.mxu1 %v5029_v40  ;;  %v5066_v40 = vld [vmem:[%s5480_s8 + $0x11] ss:$0 sm:$0xff] }
 0x1dc   :  { %v2281_v44 = vadd.f32 %v2280_v24, %v2268_v5 }
 0x1de   :  { %2832 = vmatpush.bf16.msrb.mxu3 %v4527_v26  ;;  %2984 = vmatpush.bf16.msra.mxu0 %v5019_v22  ;;  %v5016_v26 = vld [vmem:[#allocation7] sm:$0xff] }
 0x1df   :  { %2996 = vmatpush.bf16.msra.mxu1 %v5028_v27 }
 0x1e1   :  { %v2269_v31 = vpop.f32.mrf.mxu2 }
 0x1e2   :  { %v2282_v35 = vpop.f32.mrf.mxu3  ;;  %2833 = vmatpush.bf16.msrb.mxu3 %v4519_v1  ;;  %2985 = vmatpush.bf16.msra.mxu0 %v5018_v8  ;;  %v5025_v31 = vld [vmem:[#allocation7 + $0x48] sm:$0xff]  ;;  %v5024_v1 = vld [vmem:[#allocation7 + $0x40] sm:$0xff] }
 0x1e3   :  { %2997 = vmatpush.bf16.msra.mxu1 %v5027_v28  ;;  %v5065_v8 = vld [vmem:[%s5479_s7] ss:$0 sm:$0xff] }
 0x1e6   :  { %2834 = vmatpush.bf16.msrb.mxu3 %v4511_v36  ;;  %2986 = vmatpush.bf16.msra.mxu0 %v5017_v25 }
 0x1e7   :  { %2998 = vmatpush.bf16.msra.mxu1 %v5026_v30 }
 0x1ea   :  { %2835 = vmatpush.bf16.msrb.mxu3 %v4503_v39  ;;  %2987 = vmatpush.bf16.msra.mxu0 %v5016_v26 }
 0x1eb   :  { %2999 = vmatpush.bf16.msra.mxu1 %v5025_v31 }
 0x1ec   :  { %v2293_v41 = vpop.f32.mrf.mxu0 }
 0x1ed   :  { %v2294_v45 = vadd.f32 %v2293_v41, %v2281_v44 }
 0x1ee   :  { %2836 = vmatpush.bf16.msrb.mxu3 %v4495_v29 }
 0x1ef   :  { %v2306_v37 = vpop.f32.mrf.mxu1  ;;  %3000 = vmatpush.bf16.msra.mxu1 %v5024_v1 }
 0x1f0   :  { %v2307_v47 = vadd.f32 %v2306_v37, %v2294_v45  ;;  %v5037_v45 = vld [vmem:[#allocation9 + $0x28] sm:$0xff] }
 0x1f1   :  { %3079 = vmatpush.bf16.msra.mxu2 %v5037_v45 }
 0x1f4   :  { %v2295_v46 = vpop.f32.mrf.mxu0 }
 0x1f5   :  { %v5036_v46 = vld [vmem:[#allocation9 + $0x20] sm:$0xff] }
 0x1f6   :  { %3080 = vmatpush.bf16.msra.mxu2 %v5036_v46 }
 0x1f7   :  { %v2308_v51 = vpop.f32.mrf.mxu1 }
 0x1f8   :  { %v5035_v51 = vld [vmem:[#allocation9 + $0x18] sm:$0xff] }
 0x1f9   :  { %v2319_v49 = vpop.f32.mrf.mxu2 }
 0x1fa   :  { %v2320_v52 = vadd.f32 %v2319_v49, %v2307_v47  ;;  %v2332_v53 = vpop.f32.mrf.mxu3  ;;  %3081 = vmatpush.bf16.msra.mxu2 %v5035_v51  ;;  %v5034_v47 = vld [vmem:[#allocation9 + $0x10] sm:$0xff]  ;;  %v5033_v49 = vld [vmem:[#allocation9 + $0x8] sm:$0xff] }
 0x1fc   :  { %v2333_v23 = vadd.f32 %v2332_v53, %v2320_v52  ;;  %v5032_v52 = vld [vmem:[#allocation9] sm:$0xff]  ;;  %v5047_v53 = vld [vmem:[#allocation10 + $0x38] sm:$0xff] }
 0x1fe   :  { %v2339_v55 = vmul.f32 0.1, %v2333_v23  ;;  %3082 = vmatpush.bf16.msra.mxu2 %v5034_v47 }
 0x200   :  { %v2343_v57 = vmax.f32 %v2333_v23, %v2339_v55  ;;  %v5046_v23 = vld [vmem:[#allocation10 + $0x30] sm:$0xff]  ;;  %v5045_v55 = vld [vmem:[#allocation10 + $0x28] sm:$0xff] }
 0x201   :  { %v2321_v58 = vpop.f32.mrf.mxu2 }
 0x202   :  { %v2347_v59 = vpack.c.bf16 %v2343_v57, %v2343_v57  ;;  %v2334_v56 = vpop.f32.mrf.mxu3  ;;  %3083 = vmatpush.bf16.msra.mxu2 %v5033_v49  ;;  %v5044_v58 = vld [vmem:[#allocation10 + $0x20] sm:$0xff] }
 0x204   :  { %2785 = vmatmul.bf16.vlgmr.msra.gmra.mxu3 %v2347_v59 }
 0x205   :  { %3161 = vmatpush.bf16.msra.mxu3 %v5047_v53 }
 0x206   :  { %3084 = vmatpush.bf16.msra.mxu2 %v5032_v52 }
 0x209   :  { %3162 = vmatpush.bf16.msra.mxu3 %v5046_v23 }
 0x20c   :  { %v2747_v60 = vpop.f32.mrf.mxu0 }
 0x20d   :  { %v2748_v20 = vadd.f32 %v2747_v60, %v2414_v13  ;;  %v2760_v61 = vpop.f32.mrf.mxu1  ;;  %3163 = vmatpush.bf16.msra.mxu3 %v5045_v55  ;;  %v5042_v13 = vld [vmem:[#allocation10 + $0x10] sm:$0xff] }
 0x20f   :  { %v2761_v62 = vadd.f32 %v2760_v61, %v2748_v20 }
 0x211   :  { %3164 = vmatpush.bf16.msra.mxu3 %v5044_v58 }
 0x214   :  { %v2749_v63 = vpop.f32.mrf.mxu0  ;;  %2837 = vmatmul.bf16.vlgmr.msrb.gmra.mxu3 %v2347_v59  ;;  %v5043_v59 = vld [vmem:[#allocation10 + $0x18] sm:$0xff] }
 0x215   :  { %v2762_v4 = vpop.f32.mrf.mxu1  ;;  %3165 = vmatpush.bf16.msra.mxu3 %v5043_v59 }
 0x219   :  { %3166 = vmatpush.bf16.msra.mxu3 %v5042_v13 }
 0x22c   :  { %v2799_v7 = vpop.f32.mrf.mxu0 }
 0x22d   :  { %v2800_v19 = vadd.f32 %v2799_v7, %v2415_v2  ;;  %v2812_v9 = vpop.f32.mrf.mxu1  ;;  %v5041_v7 = vld [vmem:[#allocation10 + $0x8] sm:$0xff] }
 0x22e   :  { %3167 = vmatpush.bf16.msra.mxu3 %v5041_v7 }
 0x22f   :  { %v2813_v11 = vadd.f32 %v2812_v9, %v2800_v19  ;;  %v5040_v19 = vld [vmem:[#allocation10] sm:$0xff]  ;;  %v5063_v9 = vld [vmem:[%s5480_s8 + $0xf] ss:$0 sm:$0xff] }
 0x232   :  { %3168 = vmatpush.bf16.msra.mxu3 %v5040_v19 }
 0x234   :  { %v2801_v48 = vpop.f32.mrf.mxu0 }
 0x235   :  { %v2814_v12 = vpop.f32.mrf.mxu1 }
 0x247   :  { %v2773_v10 = vpop.f32.mrf.mxu2 }
 0x248   :  { %v2774_v35 = vadd.f32 %v2773_v10, %v2761_v62 }
 0x24f   :  { %v2775_v34 = vpop.f32.mrf.mxu2 }
 0x257   :  { %v2825_v21 = vpop.f32.mrf.mxu2 }
 0x258   :  { %v2826_v41 = vadd.f32 %v2825_v21, %v2813_v11 }
 0x25f   :  { %v2827_v24 = vpop.f32.mrf.mxu2 }
 0x287   :  { %v2786_v36 = vpop.f32.mrf.mxu3 }
 0x288   :  { %v2787_v18 = vadd.f32 %v2786_v36, %v2774_v35 }
 0x28a   :  { %v2842_v50 = vmul.f32 0.1, %v2787_v18 }
 0x28c   :  { %v2844_v6 = vmax.f32 %v2787_v18, %v2842_v50 }
 0x28e   :  { %v2846_v38 = vpack.c.bf16 %v2844_v6, %v2844_v6 }
 0x28f   :  { %v2788_v39 = vpop.f32.mrf.mxu3 }
 0x290   :  { %2988 = vmatmul.bf16.vlgmr.msra.gmra.mxu0 %v2846_v38 }
 0x297   :  { %v2838_v5 = vpop.f32.mrf.mxu3 }
 0x298   :  { %v2839_v37 = vadd.f32 %v2838_v5, %v2826_v41 }
 0x29a   :  { %v2843_v42 = vmul.f32 0.1, %v2839_v37 }
 0x29c   :  { %v2845_v43 = vmax.f32 %v2839_v37, %v2843_v42 }
 0x29e   :  { %v2847_v29 = vpack.c.bf16 %v2845_v43, %v2845_v43 }
 0x29f   :  { %v2840_v44 = vpop.f32.mrf.mxu3 }
 0x2a0   :  { %3001 = vmatmul.bf16.vlgmr.msra.gmra.mxu1 %v2847_v29 }
 0x30d   :  { %v2989_v57 = vpop.f32.mrf.mxu0 }
 0x30e   :  { %v2990_v60 = vadd.f32 %v5062_v3, %v2989_v57 }
 0x315   :  { %v2991_v56 = vpop.f32.mrf.mxu0 }
 0x31d   :  { %v3002_v20 = vpop.f32.mrf.mxu1 }
 0x31e   :  { %v3003_v61 = vadd.f32 %v3002_v20, %v2990_v60 }
 0x320   :  { %v3006_v62 = vmul.f32 0.1, %v3003_v61 }
 0x322   :  { %v3007_v63 = vmax.f32 %v3003_v61, %v3006_v62 }
 0x324   :  { %v3008_v4 = vpack.c.bf16 %v3007_v63, %v3007_v63 }
 0x325   :  { %v3004_v2 = vpop.f32.mrf.mxu1 }
 0x326   :  { %3085 = vmatmul.bf16.vlgmr.msra.gmra.mxu2 %v3008_v4 }
 0x3a9   :  { %v3086_v11 = vpop.f32.mrf.mxu2 }
 0x3aa   :  { %v3087_v48 = vadd.f32 %v5063_v9, %v3086_v11 }
 0x3ac   :  { %v3090_v12 = vmul.f32 0.1, %v3087_v48 }
 0x3ae   :  { %v3091_v54 = vmax.f32 %v3087_v48, %v3090_v12 }
 0x3b0   :  { %v3092_v14 = vpack.c.bf16 %v3091_v54, %v3091_v54 }
 0x3b1   :  { %v3088_v15 = vpop.f32.mrf.mxu2 }
 0x3b2   :  { %3169 = vmatmul.bf16.vlgmr.msra.gmra.mxu3 %v3092_v14 }
 0x435   :  { %v3170_v17 = vpop.f32.mrf.mxu3 }
 0x436   :  { %v3171_v10 = vadd.f32 %v5064_v16, %v3170_v17 }
 0x438   :  { %v3174_v0 = vmul.f32 0.1, %v3171_v10 }
 0x43a   :  { %v3175_v22 = vmax.f32 %v3171_v10, %v3174_v0 }
 0x43c   :  { %v3176_v34 = vpack.c.bf16 %v3175_v22, %v3175_v22 }
 0x43d   :  { %v3172_v21 = vpop.f32.mrf.mxu3 }
 0x43e   :  { %v3178_v24 = vunpack.c.l.bf16 %v3176_v34 }
 0x440   :  { %v3183_v25 = vmul.f32 %v5065_v8, %v3178_v24 }
 0x442   :  { %3184 = vadd.xlane.f32.xlu0 %v3183_v25 }
 0x4b5   :  { %v3185_v26 = vpop.xlane.xlu0 %3184 }
 0x4b6   :  { %v3189_v27 = vadd.f32 %v5066_v40, %v3185_v26 }
 0x4b8   :  { %3191 = vst.msk [vmem:[%s5481_s9] sm:$0xff] %vm3190_vm1, %v3189_v27 }
 0x4b9   :  { %3196 = vsyncpa [#allocation3], 1 }
 0x4ba   :  { %3197 = vsyncpa [#allocation5], 1 }
 0x4bb   :  { %3198 = vsyncpa [#allocation8], 1 }
 0x4bc   :  { %3199 = vsyncpa [#allocation11], 1 }

</bundles_post_ra>
